<compile_context>
chip_gen: v5e
topology: v5e:2x2
jax: 0.10.0
libtpu: 0.0.40
codegen_flags: <defaults>
</compile_context>

<pallas_src>
import jax
import jax.numpy as jnp
from jax.experimental import pallas as pl
from jax.experimental.pallas import tpu as pltpu


def _round_up(x: int, m: int) -> int:
    return (x + m - 1) // m * m


def _vmem_caps():
    """(tile_budget_bytes, vmem_limit_bytes) sized per TPU generation."""
    phys = 64 * 1024 * 1024            # conservative fallback (v7x: 64 MiB/TC)
    try:
        info = pltpu.get_tpu_info()
        phys = int(getattr(info, "vmem_capacity_bytes", phys) or phys)
    except Exception:
        pass
    budget = min(int(phys * 0.70), 100 * 1024 * 1024)   # tile-sizing budget
    limit = min(int(phys * 0.85), 112 * 1024 * 1024)    # scoped VMEM limit
    return budget, limit


def _pick_tile(N, T, H, feat_bytes, budget_bytes):
    """Largest batch tile (multiple of 8, <=128) that fits the VMEM budget."""
    # Per batch row in a tile:
    #   2 inputs * 2 pipeline buffers * T*H*feat_bytes     (px/py feature blocks)
    # + ~2 * T*H*4                                         (f32 elementwise temps)
    # + masks + pooled/projected rows (small)
    per_row = 4 * T * H * feat_bytes + 2 * T * H * 4 + 4 * T * 4 + 8 * H * 4
    fixed = H * H * 4 + 8 * H * 4 + (1 << 16)             # resident weights + slack
    tn = (budget_bytes - fixed) // max(per_row, 1)
    tn = max(8, min(128, int(tn)))
    tn = _round_up(min(tn, max(N, 1)), 8)
    # keep >= 2 grid steps when the batch allows it (v7x has 2 TensorCores)
    if N >= 32 and _round_up(N, tn) == tn:
        tn = _round_up((N + 1) // 2, 8)
    return tn


def _speaker_kernel(mx_ref, my_ref, x_ref, y_ref, wa_ref, ba_ref, wlt_ref,
                    bl_ref, o_ref):
    wa = wa_ref[...]           # (1, H)  f32  attention Linear(H,1) weight (VMEM resident)
    ba = ba_ref[0, 0]          # scalar       attention bias (SMEM)
    wlt = wlt_ref[...]         # (H, H)  f32  Linear(H,H) weight, pre-transposed (in,out)
    bl = bl_ref[...]           # (1, H)  f32  Linear(H,H) bias

    x = x_ref[...]             # (tn, T, H)  feature dtype (bf16 or f32)
    y = y_ref[...]             # (tn, T, H)
    tn = x.shape[0]
    wa_b = wa[None]            # (1, 1, H) -- hoisted, traced once

    def pool(feats, mask_add):
        # attention logits W(feats).squeeze(-1); products/accumulation in f32
        logits = jnp.sum(feats * wa_b, axis=-1) + ba          # (tn, T) f32
        # PyTorch adds the *boolean* pad mask promoted to 0/1 float (not -inf).
        logits = logits + mask_add
        m = jnp.max(logits, axis=-1, keepdims=True)
        e = jnp.exp(logits - m)
        att_w = e / jnp.sum(e, axis=-1, keepdims=True)        # exact softmax
        # weighted sum over time, accumulated in f32 -> (tn, H)
        return jnp.sum(feats * att_w[:, :, None], axis=1)

    pooled_x = pool(x, mx_ref[...])
    pooled_y = pool(y, my_ref[...])

    # Fused projection: ONE MXU matmul on (2*tn, H).  tn is a multiple of 8, so
    # the sublane concat is a cheap vreg stacking, not a relayout through HBM.
    pooled = jnp.concatenate([pooled_x, pooled_y], axis=0)     # (2*tn, H) f32
    proj = jnp.dot(pooled, wlt, preferred_element_type=jnp.float32) + bl
    xo = proj[:tn]
    yo = proj[tn:]

    # per-batch dot product -> (tn, 1) column (minimal writeback, no transpose)
    o_ref[...] = jnp.sum(xo * yo, axis=-1, keepdims=True)


def speaker_level_forward(px, py, mask_x, mask_y, wa, ba, wl, bl, *,
                          feature_dtype=jnp.bfloat16, tn=None):
    """px/py: (N,T,H) zero-padded features; mask_*: (N,T) 0/1 pad mask (added
    to logits, PyTorch semantics); wa:(1,H) ba:(1,1) wl:(H,H) bl:(1,H)."""
    N, T, H = px.shape
    f32 = jnp.float32
    feat_bytes = jnp.dtype(feature_dtype).itemsize

    budget, vmem_limit = _vmem_caps()
    if tn is None:
        tn = _pick_tile(N, T, H, feat_bytes, budget)
    Np = _round_up(max(N, 1), tn)

    def pad_batch(a):
        # only the batch dim is ever padded; fused by XLA with the dtype cast
        if a.shape[0] == Np:
            return a
        pad = [(0, Np - a.shape[0])] + [(0, 0)] * (a.ndim - 1)
        return jnp.pad(a, pad)

    px_p = pad_batch(px.astype(feature_dtype))
    py_p = pad_batch(py.astype(feature_dtype))
    mx_p = pad_batch(mask_x.astype(f32))
    my_p = pad_batch(mask_y.astype(f32))

    wa_p = wa.astype(f32).reshape(1, H)
    wlt_p = wl.astype(f32).T               # pre-transpose once: no in-kernel .T
    bl_p = bl.astype(f32).reshape(1, H)
    ba_s = ba.astype(f32).reshape(1, 1)

    grid = (Np // tn,)
    out = pl.pallas_call(
        _speaker_kernel,
        out_shape=jax.ShapeDtypeStruct((Np, 1), f32),
        grid_spec=pltpu.PrefetchScalarGridSpec(
            num_scalar_prefetch=0,
            grid=grid,
            in_specs=[
                pl.BlockSpec((tn, T), lambda i: (i, 0)),             # mask_x tile
                pl.BlockSpec((tn, T), lambda i: (i, 0)),             # mask_y tile
                pl.BlockSpec((tn, T, H), lambda i: (i, 0, 0)),       # px tile (bf16)
                pl.BlockSpec((tn, T, H), lambda i: (i, 0, 0)),       # py tile (bf16)
                pl.BlockSpec(memory_space=pltpu.MemorySpace.VMEM),   # wa (resident)
                pl.BlockSpec(memory_space=pltpu.MemorySpace.SMEM),   # ba scalar
                pl.BlockSpec(memory_space=pltpu.MemorySpace.VMEM),   # wl^T (resident)
                pl.BlockSpec(memory_space=pltpu.MemorySpace.VMEM),   # bl (resident)
            ],
            out_specs=pl.BlockSpec((tn, 1), lambda i: (i, 0)),
        ),
        compiler_params=pltpu.CompilerParams(
            dimension_semantics=("parallel",),        # megacore / v7x 2-TC sharding
            vmem_limit_bytes=int(vmem_limit),
        ),
    )(mx_p, my_p, px_p, py_p, wa_p, ba_s, wlt_p, bl_p)

    return out[:N, 0]            # -> (N,), matches .view(-1)


def _reference(px, py, mask_x, mask_y, wa, ba, wl, bl):
    hi = jax.lax.Precision.HIGHEST

    def pool_lin(feats, mask_add):
        logits = jnp.einsum('nth,h->nt', feats, wa[0], precision=hi) + ba[0, 0]
        logits = logits + mask_add
        w = jax.nn.softmax(logits, axis=-1)
        pooled = jnp.sum(feats * w[:, :, None], axis=1)
        return jnp.matmul(pooled, wl.T, precision=hi) + bl[0]

    xo = pool_lin(px, mask_x)
    yo = pool_lin(py, mask_y)
    return jnp.sum(xo * yo, axis=-1)


if __name__ == "__main__":
    key = jax.random.PRNGKey(0)
    k1, k2, k3, k4, k5 = jax.random.split(key, 5)

    N, T, H = 2, 8, 32
    lengths_x = jnp.array([8, 6], dtype=jnp.int32)
    lengths_y = jnp.array([8, 5], dtype=jnp.int32)

    fx = jax.random.normal(k1, (N, T, H), jnp.float32)
    fy = jax.random.normal(k2, (N, T, H), jnp.float32)

    # emulate torch.nn.utils.rnn.pad_sequence (zero padding beyond each length)
    t_idx = jnp.arange(T)
    valid_x = t_idx[None, :] < lengths_x[:, None]
    valid_y = t_idx[None, :] < lengths_y[:, None]
    px = fx * valid_x[:, :, None].astype(jnp.float32)
    py = fy * valid_y[:, :, None].astype(jnp.float32)

    # PyTorch adds the boolean pad mask directly to the logits -> 0/1 float
    mask_x = (~valid_x).astype(jnp.float32)
    mask_y = (~valid_y).astype(jnp.float32)

    # deterministic parameters (PyTorch Linear layout: weight (out, in))
    wa = jax.random.normal(k3, (1, H), jnp.float32) / jnp.sqrt(H)   # Linear(H,1).weight
    ba = jnp.zeros((1, 1), jnp.float32)                             # Linear(H,1).bias
    wl = jax.random.normal(k4, (H, H), jnp.float32) / jnp.sqrt(H)   # Linear(H,H).weight
    bl = 0.01 * jax.random.normal(k5, (1, H), jnp.float32)          # Linear(H,H).bias

    # --- exact-precision path (f32 features in HBM) vs f32 reference ---
    sim_f32 = speaker_level_forward(px, py, mask_x, mask_y, wa, ba, wl, bl,
                                    feature_dtype=jnp.float32)
    jax.block_until_ready(sim_f32)
    ref = _reference(px, py, mask_x, mask_y, wa, ba, wl, bl)
    assert sim_f32.shape == (N,)
    assert jnp.allclose(sim_f32, ref, atol=2e-3, rtol=2e-3), (sim_f32, ref)

    # --- default bf16 HBM feature path vs reference on the same rounded inputs ---
    sim_bf16 = speaker_level_forward(px, py, mask_x, mask_y, wa, ba, wl, bl)
    jax.block_until_ready(sim_bf16)
    px_r = px.astype(jnp.bfloat16).astype(jnp.float32)
    py_r = py.astype(jnp.bfloat16).astype(jnp.float32)
    ref_bf16 = _reference(px_r, py_r, mask_x, mask_y, wa, ba, wl, bl)
    assert sim_bf16.shape == (N,)
    assert jnp.allclose(sim_bf16, ref_bf16, atol=2e-3, rtol=2e-3), (sim_bf16, ref_bf16)

    print("KERNEL_OK")
</pallas_src>

<mosaic_0001>
module attributes {stable_mosaic.version = 11 : i64} {
  func.func @_speaker_kernel(%arg0: i32, %arg1: memref<8x8xf32, #tpu.memory_space<vmem>>, %arg2: memref<8x8xf32, #tpu.memory_space<vmem>>, %arg3: memref<8x8x32xf32, #tpu.memory_space<vmem>>, %arg4: memref<8x8x32xf32, #tpu.memory_space<vmem>>, %arg5: memref<1x32xf32, #tpu.memory_space<vmem>>, %arg6: memref<1x1xf32, #tpu.memory_space<smem>>, %arg7: memref<32x32xf32, #tpu.memory_space<vmem>>, %arg8: memref<1x32xf32, #tpu.memory_space<vmem>>, %arg9: memref<8x1xf32, #tpu.memory_space<vmem>>) attributes {dimension_semantics = [#tpu.dimension_semantics<parallel>], iteration_bounds = array<i64: 1>, scalar_prefetch = 0 : i64, scratch_operands = 0 : i64, tpu.core_type = #tpu.core_type<tc>, window_params = [{transform_indices = @transform_0, window_bounds = array<i64: 8, 8>}, {transform_indices = @transform_1, window_bounds = array<i64: 8, 8>}, {transform_indices = @transform_2, window_bounds = array<i64: 8, 8, 32>}, {transform_indices = @transform_3, window_bounds = array<i64: 8, 8, 32>}, {pipeline_mode = #tpu.pipeline_mode<synchronous>, transform_indices = @transform_4, window_bounds = array<i64: 1, 32>}, {transform_indices = @transform_5, window_bounds = array<i64: 1, 1>}, {pipeline_mode = #tpu.pipeline_mode<synchronous>, transform_indices = @transform_6, window_bounds = array<i64: 32, 32>}, {pipeline_mode = #tpu.pipeline_mode<synchronous>, transform_indices = @transform_7, window_bounds = array<i64: 1, 32>}, {transform_indices = @transform_8, window_bounds = array<i64: 8, 1>}]} {
    %c0 = arith.constant 0 : index
    %c0_0 = arith.constant 0 : index
    %0 = vector.load %arg5[%c0, %c0_0] : memref<1x32xf32, #tpu.memory_space<vmem>>, vector<1x32xf32>
    %c0_1 = arith.constant 0 : index
    %c0_2 = arith.constant 0 : index
    %1 = memref.load %arg6[%c0_1, %c0_2] : memref<1x1xf32, #tpu.memory_space<smem>>
    %c0_3 = arith.constant 0 : index
    %c0_4 = arith.constant 0 : index
    %2 = vector.load %arg7[%c0_3, %c0_4] : memref<32x32xf32, #tpu.memory_space<vmem>>, vector<32x32xf32>
    %c0_5 = arith.constant 0 : index
    %c0_6 = arith.constant 0 : index
    %3 = vector.load %arg8[%c0_5, %c0_6] : memref<1x32xf32, #tpu.memory_space<vmem>>, vector<1x32xf32>
    %c0_7 = arith.constant 0 : index
    %c0_8 = arith.constant 0 : index
    %c0_9 = arith.constant 0 : index
    %4 = vector.load %arg3[%c0_7, %c0_8, %c0_9] : memref<8x8x32xf32, #tpu.memory_space<vmem>>, vector<8x8x32xf32>
    %c0_10 = arith.constant 0 : index
    %c0_11 = arith.constant 0 : index
    %c0_12 = arith.constant 0 : index
    %5 = vector.load %arg4[%c0_10, %c0_11, %c0_12] : memref<8x8x32xf32, #tpu.memory_space<vmem>>, vector<8x8x32xf32>
    %6 = vector.shape_cast %0 : vector<1x32xf32> to vector<1x1x32xf32>
    %c0_13 = arith.constant 0 : index
    %c0_14 = arith.constant 0 : index
    %7 = vector.load %arg1[%c0_13, %c0_14] : memref<8x8xf32, #tpu.memory_space<vmem>>, vector<8x8xf32>
    %8 = vector.broadcast %6 : vector<1x1x32xf32> to vector<8x8x32xf32>
    %9 = arith.mulf %4, %8 : vector<8x8x32xf32>
    %cst = arith.constant dense<0.000000e+00> : vector<8x8xf32>
    %10 = vector.multi_reduction <add>, %9, %cst [2] : vector<8x8x32xf32> to vector<8x8xf32>
    %11 = vector.broadcast %1 : f32 to vector<8x8xf32>
    %12 = arith.addf %10, %11 : vector<8x8xf32>
    %13 = arith.addf %12, %7 : vector<8x8xf32>
    %cst_15 = arith.constant dense<0xFF800000> : vector<8xf32>
    %14 = vector.multi_reduction <maximumf>, %13, %cst_15 [1] : vector<8x8xf32> to vector<8xf32>
    %15 = vector.shape_cast %14 : vector<8xf32> to vector<8x1xf32>
    %16 = vector.broadcast %15 : vector<8x1xf32> to vector<8x8xf32>
    %17 = arith.subf %13, %16 : vector<8x8xf32>
    %18 = math.exp %17 : vector<8x8xf32>
    %cst_16 = arith.constant dense<0.000000e+00> : vector<8xf32>
    %19 = vector.multi_reduction <add>, %18, %cst_16 [1] : vector<8x8xf32> to vector<8xf32>
    %20 = vector.shape_cast %19 : vector<8xf32> to vector<8x1xf32>
    %21 = vector.broadcast %20 : vector<8x1xf32> to vector<8x8xf32>
    %22 = arith.divf %18, %21 : vector<8x8xf32>
    %23 = vector.shape_cast %22 : vector<8x8xf32> to vector<8x8x1xf32>
    %24 = vector.broadcast %23 : vector<8x8x1xf32> to vector<8x8x32xf32>
    %25 = arith.mulf %4, %24 : vector<8x8x32xf32>
    %cst_17 = arith.constant dense<0.000000e+00> : vector<8x32xf32>
    %26 = vector.multi_reduction <add>, %25, %cst_17 [1] : vector<8x8x32xf32> to vector<8x32xf32>
    %c0_18 = arith.constant 0 : index
    %c0_19 = arith.constant 0 : index
    %27 = vector.load %arg2[%c0_18, %c0_19] : memref<8x8xf32, #tpu.memory_space<vmem>>, vector<8x8xf32>
    %28 = vector.broadcast %6 : vector<1x1x32xf32> to vector<8x8x32xf32>
    %29 = arith.mulf %5, %28 : vector<8x8x32xf32>
    %cst_20 = arith.constant dense<0.000000e+00> : vector<8x8xf32>
    %30 = vector.multi_reduction <add>, %29, %cst_20 [2] : vector<8x8x32xf32> to vector<8x8xf32>
    %31 = vector.broadcast %1 : f32 to vector<8x8xf32>
    %32 = arith.addf %30, %31 : vector<8x8xf32>
    %33 = arith.addf %32, %27 : vector<8x8xf32>
    %cst_21 = arith.constant dense<0xFF800000> : vector<8xf32>
    %34 = vector.multi_reduction <maximumf>, %33, %cst_21 [1] : vector<8x8xf32> to vector<8xf32>
    %35 = vector.shape_cast %34 : vector<8xf32> to vector<8x1xf32>
    %36 = vector.broadcast %35 : vector<8x1xf32> to vector<8x8xf32>
    %37 = arith.subf %33, %36 : vector<8x8xf32>
    %38 = math.exp %37 : vector<8x8xf32>
    %cst_22 = arith.constant dense<0.000000e+00> : vector<8xf32>
    %39 = vector.multi_reduction <add>, %38, %cst_22 [1] : vector<8x8xf32> to vector<8xf32>
    %40 = vector.shape_cast %39 : vector<8xf32> to vector<8x1xf32>
    %41 = vector.broadcast %40 : vector<8x1xf32> to vector<8x8xf32>
    %42 = arith.divf %38, %41 : vector<8x8xf32>
    %43 = vector.shape_cast %42 : vector<8x8xf32> to vector<8x8x1xf32>
    %44 = vector.broadcast %43 : vector<8x8x1xf32> to vector<8x8x32xf32>
    %45 = arith.mulf %5, %44 : vector<8x8x32xf32>
    %cst_23 = arith.constant dense<0.000000e+00> : vector<8x32xf32>
    %46 = vector.multi_reduction <add>, %45, %cst_23 [1] : vector<8x8x32xf32> to vector<8x32xf32>
    %47 = tpu.concatenate %26, %46 in 0 : vector<8x32xf32>, vector<8x32xf32> -> vector<16x32xf32>
    %cst_24 = arith.constant dense<0.000000e+00> : vector<16x32xf32>
    %48 = tpu.matmul %47, %2, %cst_24 {dimension_numbers = #tpu.dot_dimension_numbers<[1], [0], [0], [1], [0, 0, 1, 1], [], []>} : vector<16x32xf32>, vector<32x32xf32>, vector<16x32xf32> -> vector<16x32xf32>
    %49 = vector.broadcast %3 : vector<1x32xf32> to vector<16x32xf32>
    %50 = arith.addf %48, %49 : vector<16x32xf32>
    %51 = vector.extract_strided_slice %50 {offsets = [0, 0], sizes = [8, 32], strides = [1, 1]} : vector<16x32xf32> to vector<8x32xf32>
    %52 = vector.extract_strided_slice %50 {offsets = [8, 0], sizes = [8, 32], strides = [1, 1]} : vector<16x32xf32> to vector<8x32xf32>
    %53 = arith.mulf %51, %52 : vector<8x32xf32>
    %cst_25 = arith.constant dense<0.000000e+00> : vector<8xf32>
    %54 = vector.multi_reduction <add>, %53, %cst_25 [1] : vector<8x32xf32> to vector<8xf32>
    %55 = vector.shape_cast %54 : vector<8xf32> to vector<8x1xf32>
    %c0_26 = arith.constant 0 : index
    %c0_27 = arith.constant 0 : index
    %56 = vector.load %arg9[%c0_26, %c0_27] : memref<8x1xf32, #tpu.memory_space<vmem>>, vector<8x1xf32>
    tpu.vector_store %arg9[%c0_26, %c0_27], %55 {strides = array<i32>} : memref<8x1xf32, #tpu.memory_space<vmem>>, vector<8x1xf32>,
    return
  }
  func.func @transform_0(%arg0: i32) -> (i32, i32) {
    %c0_i32 = arith.constant 0 : i32
    %c0_i32_0 = arith.constant 0 : i32
    return %arg0, %c0_i32 : i32, i32
  }
  func.func @transform_1(%arg0: i32) -> (i32, i32) {
    %c0_i32 = arith.constant 0 : i32
    %c0_i32_0 = arith.constant 0 : i32
    return %arg0, %c0_i32 : i32, i32
  }
  func.func @transform_2(%arg0: i32) -> (i32, i32, i32) {
    %c0_i32 = arith.constant 0 : i32
    %c0_i32_0 = arith.constant 0 : i32
    %c0_i32_1 = arith.constant 0 : i32
    return %arg0, %c0_i32, %c0_i32_0 : i32, i32, i32
  }
  func.func @transform_3(%arg0: i32) -> (i32, i32, i32) {
    %c0_i32 = arith.constant 0 : i32
    %c0_i32_0 = arith.constant 0 : i32
    %c0_i32_1 = arith.constant 0 : i32
    return %arg0, %c0_i32, %c0_i32_0 : i32, i32, i32
  }
  func.func @transform_4(%arg0: i32) -> (i32, i32) {
    %c0_i32 = arith.constant 0 : i32
    %c0_i32_0 = arith.constant 0 : i32
    %c0_i32_1 = arith.constant 0 : i32
    return %c0_i32, %c0_i32_0 : i32, i32
  }
  func.func @transform_5(%arg0: i32) -> (i32, i32) {
    %c0_i32 = arith.constant 0 : i32
    %c0_i32_0 = arith.constant 0 : i32
    %c0_i32_1 = arith.constant 0 : i32
    return %c0_i32, %c0_i32_0 : i32, i32
  }
  func.func @transform_6(%arg0: i32) -> (i32, i32) {
    %c0_i32 = arith.constant 0 : i32
    %c0_i32_0 = arith.constant 0 : i32
    %c0_i32_1 = arith.constant 0 : i32
    return %c0_i32, %c0_i32_0 : i32, i32
  }
  func.func @transform_7(%arg0: i32) -> (i32, i32) {
    %c0_i32 = arith.constant 0 : i32
    %c0_i32_0 = arith.constant 0 : i32
    %c0_i32_1 = arith.constant 0 : i32
    return %c0_i32, %c0_i32_0 : i32, i32
  }
  func.func @transform_8(%arg0: i32) -> (i32, i32) {
    %c0_i32 = arith.constant 0 : i32
    %c0_i32_0 = arith.constant 0 : i32
    return %arg0, %c0_i32 : i32, i32
  }
}

</mosaic_0001>

<bundles_post_ra>
// kernel: tpu_custom_call.1
= control target key start
LH: loop header
LB: loop body
LE: loop exit
PB: predicated region body
PF: predicated region fallthrough
CT: control target
= control target key end

     0   :  { %14 = vsyncpa [#allocation4], 0  ;;  %s2110_s0 = inlined_call_operand.hbm [shape: f32[8,8], index: 0, kind: input, shape index: {}]   ;;  %s2111_s1 = inlined_call_operand.hbm [shape: f32[8,8], index: 1, kind: input, shape index: {}]   ;;  %s2112_s2 = inlined_call_operand.hbm [shape: f32[8,8,32], index: 2, kind: input, shape index: {}]   ;;  %s2113_s3 = inlined_call_operand.hbm [shape: f32[8,8,32], index: 3, kind: input, shape index: {}]   ;;  %s2114_s4 = inlined_call_operand.vmem [shape: f32[1,32], index: 4, kind: input, shape index: {}]   ;;  %s2115_s5 = inlined_call_operand.<no memory space> [shape: f32[1,1], index: 5, kind: input, shape index: {}]   ;;  %s2116_s6 = inlined_call_operand.hbm [shape: f32[32,32], index: 6, kind: input, shape index: {}]   ;;  %s2117_s7 = inlined_call_operand.vmem [shape: f32[1,32], index: 7, kind: input, shape index: {}]   ;;  %s2118_s8 = inlined_call_operand.vmem [shape: f32[8,1], index: 8, kind: output, shape index: {}]  }
   0x1   :  { %15 = vsyncpa [#allocation6], 0  ;;  %s33_s29 = sshll.u32 %s2111_s1, 4  ;;  %s34_s29 = int_to_ptr.hbm [resolvable:$true] %s33_s29 }
   0x2   :  { %16 = vsyncpa [#allocation9], 0  ;;  %s1439_s30 = smov [#allocation5]   ;;  %s56_s12 = sshll.u32 %s2113_s3, 4  ;;  %s57_s12 = int_to_ptr.hbm [resolvable:$true] %s56_s12 }
   0x3   :  { %s35_s9 = sshll.u32 %s1439_s30, 4  ;;  %s1440_s13 = smov [#allocation8]   ;;  %s36_s9 = int_to_ptr.vmem [resolvable:$true] %s35_s9 }
   0x4   :  { %38 = dma.hbm_to_vmem [thread:$0]  %s34_s29, 128, %s36_s9, [#allocation6]  }
   0x5   :  { %s58_s14 = sshll.u32 %s1440_s13, 4  ;;  %s22_s17 = sshll.u32 %s2110_s0, 4  ;;  %s59_s14 = int_to_ptr.vmem [resolvable:$true] %s58_s14  ;;  %s23_s17 = int_to_ptr.hbm [resolvable:$true] %s22_s17 }
   0x6   :  { %s1441_s1 = smov 128   ;;  %s1442_s18 = smov 8  }
   0x7   :  { %64 = dma.hbm_to_vmem [thread:$0]  %s57_s12, 1024, %s59_s14, [#allocation9], %s1441_s1, %s1441_s1, %s1442_s18  }
   0x8   :  { %s43_s21 = sshll.u32 %s2112_s2, 4  ;;  %s1443_s22 = smov [#allocation3]   ;;  %s44_s21 = int_to_ptr.hbm [resolvable:$true] %s43_s21 }
   0x9   :  { %s24_s23 = sshll.u32 %s1443_s22, 4  ;;  %s1444_s3 = smov [#allocation7]   ;;  %s25_s23 = int_to_ptr.vmem [resolvable:$true] %s24_s23 }
   0xa   :  { %27 = dma.hbm_to_vmem [thread:$0]  %s23_s17, 128, %s25_s23, [#allocation4]  }
   0xb   :  { %s45_s24 = sshll.u32 %s1444_s3, 4  ;;  %s73_s0 = sshll.u32 %s2116_s6, 4  ;;  %s46_s24 = int_to_ptr.vmem [resolvable:$true] %s45_s24  ;;  %s74_s0 = int_to_ptr.hbm [resolvable:$true] %s73_s0 }
   0xc   :  { %51 = dma.hbm_to_vmem [thread:$0]  %s44_s21, 1024, %s46_s24, [#allocation6], %s1441_s1, %s1441_s1, %s1442_s18  }
   0xd   :  { %s1445_s27 = smov [#allocation10]  }
   0xe   :  { %s75_s28 = sshll.u32 %s1445_s27, 4  ;;  %s76_s28 = int_to_ptr.vmem [resolvable:$true] %s75_s28 }
   0xf   :  { %81 = dma.hbm_to_vmem [thread:$0]  %s74_s0, 512, %s76_s28, [#allocation9], %s1441_s1, %s1441_s1, %s1442_s18  }
  0x10   :  { %1433 = dma.done.wait [#allocation4], 128  }
  0x11   :  { %1434 = vsyncadd [#allocation4], 4294967168 }
  0x12   :  { %1435 = dma.done.wait [#allocation6], 1152  }
  0x13   :  { %1436 = vsyncadd [#allocation6], 4294966144 }
  0x14   :  { %1437 = dma.done.wait [#allocation9], 1536  }
  0x15   :  { %1438 = vsyncadd [#allocation9], 4294965760  ;;  %v115_v0 = vld [vmem:[#allocation7 + $0x20] sm:$0xff]  ;;  %v1510_v1 = vld [vmem:[%s2114_s4] ss:$0 sm:$0xff]  ;;  %vm139_vm0 = vcmask 261120   ;;  %v175_v16 = vlaneseq }
  0x16   :  { %v113_v2 = vld [vmem:[#allocation7 + $0x10] sm:$0xff]  ;;  %v111_v3 = vld [vmem:[#allocation7] sm:$0xff]  ;;  %v135_v4 = vmul.f32 %v1510_v1, %v115_v0  ;;  %v116_v7 = vld [vmem:[#allocation7 + $0x28] sm:$0xff]  ;;  %vm288_vm1 = vcmask 1041409   ;;  %vm290_vm2 = vcmask 1042434   ;;  %vm292_vm3 = vcmask 1043459  }
  0x17   :  { %v133_v5 = vmul.f32 %v1510_v1, %v113_v2  ;;  %v131_v6 = vmul.f32 %v1510_v1, %v111_v3  ;;  %v114_v8 = vld [vmem:[#allocation7 + $0x18] sm:$0xff]  ;;  %v112_v12 = vld [vmem:[#allocation7 + $0x8] sm:$0xff]  ;;  %v136_v13 = vmul.f32 %v1510_v1, %v116_v7  ;;  %v121_v20 = vld [vmem:[#allocation8 + $0x10] sm:$0xff]  ;;  %v176_v22 = vshrl.u32 %v175_v16, 7 }
  0x18   :  { %v152_v9 = vsel %vm139_vm0, %v135_v4, 0.0  ;;  %v134_v14 = vmul.f32 %v1510_v1, %v114_v8  ;;  %v132_v15 = vmul.f32 %v1510_v1, %v112_v12  ;;  %v118_v21 = vld [vmem:[#allocation7 + $0x38] sm:$0xff]  ;;  %v117_v23 = vld [vmem:[#allocation7 + $0x30] sm:$0xff]  ;;  %v643_v24 = vmul.f32 %v1510_v1, %v121_v20  ;;  %v123_v30 = vld [vmem:[#allocation8 + $0x20] sm:$0xff] }
  0x19   :  { %v146_v10 = vsel %vm139_vm0, %v133_v5, 0.0  ;;  %v140_v11 = vsel %vm139_vm0, %v131_v6, 0.0  ;;  %153 = vadd.xlane.f32.xlu2 %v152_v9  ;;  %v155_v17 = vsel %vm139_vm0, %v136_v13, 0.0  ;;  %v138_v25 = vmul.f32 %v1510_v1, %v118_v21  ;;  %1227 = vset.pattern.permute.xlu0 %v176_v22  ;;  %v119_v31 = vld [vmem:[#allocation8] sm:$0xff]  ;;  %v120_v32 = vld [vmem:[#allocation8 + $0x8] sm:$0xff]  ;;  %v122_v40 = vld [vmem:[#allocation8 + $0x18] sm:$0xff] }
  0x1a   :  { %147 = vadd.xlane.f32.xlu1 %v146_v10  ;;  %141 = vadd.xlane.f32.xlu0 %v140_v11  ;;  %v149_v18 = vsel %vm139_vm0, %v134_v14, 0.0  ;;  %v143_v19 = vsel %vm139_vm0, %v132_v15, 0.0  ;;  %v137_v26 = vmul.f32 %v1510_v1, %v117_v23  ;;  %v655_v27 = vsel %vm139_vm0, %v643_v24, 0.0  ;;  %v124_v39 = vld [vmem:[#allocation8 + $0x28] sm:$0xff]  ;;  %v125_v41 = vld [vmem:[#allocation8 + $0x30] sm:$0xff]  ;;  %v640_v52 = vld [vmem:[#allocation5] sm:$0xff] }
  0x1b   :  { %1226 = vset.pattern.permute.xlu2 %v176_v22  ;;  %1225 = vset.pattern.permute.xlu1 %v176_v22  ;;  %v161_v28 = vsel %vm139_vm0, %v138_v25, 0.0  ;;  %v645_v33 = vmul.f32 %v1510_v1, %v123_v30  ;;  %v641_v34 = vmul.f32 %v1510_v1, %v119_v31  ;;  %v642_v35 = vmul.f32 %v1510_v1, %v120_v32  ;;  %v127_v48 = vld [vmem:[#allocation3] sm:$0xff]  ;;  %v126_v2 = vld [vmem:[#allocation8 + $0x38] sm:$0xff] }
  0x1c   :  { %v158_v29 = vsel %vm139_vm0, %v137_v26, 0.0  ;;  %v646_v42 = vmul.f32 %v1510_v1, %v124_v39  ;;  %v644_v43 = vmul.f32 %v1510_v1, %v122_v40  ;;  %v647_v44 = vmul.f32 %v1510_v1, %v125_v41 }
  0x1d   :  { %v661_v36 = vsel %vm139_vm0, %v645_v33, 0.0  ;;  %v649_v37 = vsel %vm139_vm0, %v641_v34, 0.0  ;;  %v652_v38 = vsel %vm139_vm0, %v642_v35, 0.0  ;;  %v181_v49 = vperm.slane %v127_v48, 1 }
  0x1e   :  { %v664_v45 = vsel %vm139_vm0, %v646_v42, 0.0  ;;  %v658_v46 = vsel %vm139_vm0, %v644_v43, 0.0  ;;  %v667_v47 = vsel %vm139_vm0, %v647_v44, 0.0  ;;  %v174_v50 = vperm.slane %v127_v48, 0 }
  0x1f   :  { %v188_v51 = vperm.slane %v127_v48, 2  ;;  %v682_v53 = vperm.slane %v640_v52, 0  ;;  %v195_v54 = vperm.slane %v127_v48, 3  ;;  %v209_v55 = vperm.slane %v127_v48, 5 }
  0x20   :  { %v223_v56 = vperm.slane %v127_v48, 7  ;;  %v202_v57 = vperm.slane %v127_v48, 4  ;;  %v689_v58 = vperm.slane %v640_v52, 1  ;;  %v216_v59 = vperm.slane %v127_v48, 6 }
  0x21   :  { %156 = vadd.xlane.f32.xlu2 %v155_v17  ;;  %v703_v60 = vperm.slane %v640_v52, 3  ;;  %v696_v61 = vperm.slane %v640_v52, 2  ;;  %v710_v62 = vperm.slane %v640_v52, 4  ;;  %v717_v63 = vperm.slane %v640_v52, 5 }
  0x22   :  { %150 = vadd.xlane.f32.xlu1 %v149_v18  ;;  %144 = vadd.xlane.f32.xlu0 %v143_v19  ;;  %v724_v0 = vperm.slane %v640_v52, 6  ;;  %v731_v4 = vperm.slane %v640_v52, 7  ;;  %v648_v5 = vmul.f32 %v1510_v1, %v126_v2  ;;  %v1446_v10 = vmov 0  }
  0x23   :  { %v1548_v1 = vstv %s2115_s5  ;;  %vm2122_vm4 = vcmask 1044484   ;;  %vm2121_vm5 = vcmask 1045509   ;;  %vm2120_vm6 = vcmask 1046534  }
  0x24   :  { %v670_v7 = vsel %vm139_vm0, %v648_v5, 0.0  ;;  %vm2119_vm7 = vcmask 1047559   ;;  %vm303_vm8 = vcmask 64512  }
  0x29   :  { %656 = vadd.xlane.f32.xlu2 %v655_v27 }
  0x2a   :  { %162 = vadd.xlane.f32.xlu1 %v161_v28  ;;  %159 = vadd.xlane.f32.xlu0 %v158_v29 }
  0x31   :  { %662 = vadd.xlane.f32.xlu2 %v661_v36 }
  0x32   :  { %650 = vadd.xlane.f32.xlu1 %v649_v37  ;;  %653 = vadd.xlane.f32.xlu0 %v652_v38 }
  0x39   :  { %665 = vadd.xlane.f32.xlu2 %v664_v45 }
  0x3a   :  { %659 = vadd.xlane.f32.xlu1 %v658_v46  ;;  %668 = vadd.xlane.f32.xlu0 %v667_v47 }
  0x4e   :  { %186 = vperm.xlu0 %1227, %v181_v49  }
  0x51   :  { %179 = vperm.xlu2 %1226, %v174_v50  }
  0x53   :  { %193 = vperm.xlu1 %1225, %v188_v51  }
  0x56   :  { %687 = vperm.xlu0 %1227, %v682_v53  }
  0x59   :  { %200 = vperm.xlu2 %1226, %v195_v54  }
  0x5b   :  { %214 = vperm.xlu1 %1225, %v209_v55  }
  0x5e   :  { %228 = vperm.xlu0 %1227, %v223_v56  }
  0x61   :  { %207 = vperm.xlu2 %1226, %v202_v57  }
  0x63   :  { %694 = vperm.xlu1 %1225, %v689_v58  }
  0x66   :  { %1230 = vset.pattern.permute.xlu0 %v1446_v10 }
  0x69   :  { %221 = vperm.xlu2 %1226, %v216_v59  }
  0x6b   :  { %708 = vperm.xlu1 %1225, %v703_v60  }
  0x71   :  { %701 = vperm.xlu2 %1226, %v696_v61  }
  0x73   :  { %1229 = vset.pattern.permute.xlu1 %v1446_v10 }
  0x79   :  { %715 = vperm.xlu2 %1226, %v710_v62  }
  0x81   :  { %722 = vperm.xlu2 %1226, %v717_v63  }
  0x89   :  { %729 = vperm.xlu2 %1226, %v724_v0  }
  0x8c   :  { %v154_v3 = vpop.xlane.xlu2 %153 }
  0x8d   :  { %v142_v6 = vpop.xlane.xlu0 %141  ;;  %v148_v8 = vpop.xlane.xlu1 %147  ;;  %v169_v51 = vadd.f32 %v1548_v1, %v154_v3 }
  0x8e   :  { %v165_v21 = vadd.f32 %v1548_v1, %v142_v6  ;;  %v167_v37 = vadd.f32 %v1548_v1, %v148_v8 }
  0x91   :  { %736 = vperm.xlu2 %1226, %v731_v4  }
  0x94   :  { %v157_v9 = vpop.xlane.xlu2 %156 }
  0x95   :  { %671 = vadd.xlane.f32.xlu1 %v670_v7  ;;  %v145_v11 = vpop.xlane.xlu0 %144  ;;  %v151_v13 = vpop.xlane.xlu1 %150  ;;  %v170_v53 = vadd.f32 %v1548_v1, %v157_v9 }
  0x96   :  { %v166_v27 = vadd.f32 %v1548_v1, %v145_v11  ;;  %v168_v45 = vadd.f32 %v1548_v1, %v151_v13 }
  0x99   :  { %1228 = vset.pattern.permute.xlu2 %v1446_v10 }
  0x9c   :  { %v657_v12 = vpop.xlane.xlu2 %656 }
  0x9d   :  { %v160_v14 = vpop.xlane.xlu0 %159  ;;  %v163_v17 = vpop.xlane.xlu1 %162  ;;  %v675_v43 = vadd.f32 %v657_v12, %v1548_v1 }
  0x9e   :  { %v171_v60 = vadd.f32 %v1548_v1, %v160_v14  ;;  %v172_v3 = vadd.f32 %v1548_v1, %v163_v17 }
  0xa4   :  { %v663_v15 = vpop.xlane.xlu2 %662 }
  0xa5   :  { %v654_v19 = vpop.xlane.xlu0 %653  ;;  %v651_v20 = vpop.xlane.xlu1 %650  ;;  %v677_v54 = vadd.f32 %v663_v15, %v1548_v1 }
  0xa6   :  { %v673_v32 = vadd.f32 %v651_v20, %v1548_v1  ;;  %v674_v39 = vadd.f32 %v654_v19, %v1548_v1  ;;  %v1615_v19 = vand.u32 127, %v175_v16 }
  0xac   :  { %v666_v18 = vpop.xlane.xlu2 %665 }
  0xad   :  { %v669_v24 = vpop.xlane.xlu0 %668  ;;  %v660_v25 = vpop.xlane.xlu1 %659  ;;  %v678_v58 = vadd.f32 %v666_v18, %v1548_v1 }
  0xae   :  { %v676_v46 = vadd.f32 %v660_v25, %v1548_v1  ;;  %v679_v61 = vadd.f32 %v669_v24, %v1548_v1 }
  0xb4   :  { %v180_v22 = vpop.permute.xlu2 %179 }
  0xb5   :  { %v1551_v23 = vadd.f32 %v180_v22, %v165_v21 }
  0xb7   :  { %255 = vperm.xlu2 %1228, %v1551_v23  }
  0xbc   :  { %v201_v26 = vpop.permute.xlu2 %200 }
  0xbd   :  { %v1576_v49 = vadd.f32 %v201_v26, %v168_v45 }
  0xc0   :  { %v187_v28 = vpop.permute.xlu0 %186 }
  0xc1   :  { %v1555_v29 = vadd.f32 %v187_v28, %v166_v27 }
  0xc3   :  { %258 = vperm.xlu1 %1229, %v1555_v29  }
  0xc4   :  { %v208_v30 = vpop.permute.xlu2 %207 }
  0xc5   :  { %v194_v31 = vpop.permute.xlu1 %193  ;;  %v1583_v52 = vadd.f32 %v208_v30, %v169_v51 }
  0xc6   :  { %v1563_v38 = vadd.f32 %v194_v31, %v167_v37 }
  0xc8   :  { %v688_v33 = vpop.permute.xlu0 %687 }
  0xc9   :  { %v1559_v34 = vadd.f32 %v688_v33, %v673_v32 }
  0xcb   :  { %763 = vperm.xlu2 %1228, %v1559_v34  }
  0xcc   :  { %v222_v35 = vpop.permute.xlu2 %221 }
  0xcd   :  { %v215_v36 = vpop.permute.xlu1 %214  ;;  %v1600_v63 = vadd.f32 %v222_v35, %v171_v60 }
  0xce   :  { %v1588_v56 = vadd.f32 %v215_v36, %v170_v53 }
  0xd0   :  { %v229_v2 = vpop.permute.xlu0 %228 }
  0xd1   :  { %v1607_v4 = vadd.f32 %v229_v2, %v172_v3 }
  0xd3   :  { %261 = vperm.xlu2 %1228, %v1563_v38  }
  0xd4   :  { %v702_v40 = vpop.permute.xlu2 %701 }
  0xd5   :  { %v695_v41 = vpop.permute.xlu1 %694  ;;  %v1571_v44 = vadd.f32 %v702_v40, %v675_v43 }
  0xd6   :  { %v1567_v42 = vadd.f32 %v695_v41, %v674_v39 }
  0xd8   :  { %766 = vperm.xlu0 %1230, %v1567_v42  }
  0xdb   :  { %769 = vperm.xlu2 %1228, %v1571_v44  }
  0xdc   :  { %v716_v47 = vpop.permute.xlu2 %715 }
  0xdd   :  { %v709_v48 = vpop.permute.xlu1 %708  ;;  %v1590_v57 = vadd.f32 %v716_v47, %v677_v54 }
  0xde   :  { %v1578_v50 = vadd.f32 %v709_v48, %v676_v46 }
  0xe0   :  { %264 = vperm.xlu0 %1230, %v1576_v49   ;;  %772 = vperm.xlu1 %1229, %v1578_v50  }
  0xe3   :  { %267 = vperm.xlu2 %1228, %v1583_v52  }
  0xe4   :  { %v723_v55 = vpop.permute.xlu2 %722 }
  0xe5   :  { %v1595_v59 = vadd.f32 %v723_v55, %v678_v58 }
  0xe8   :  { %775 = vperm.xlu0 %1230, %v1590_v57   ;;  %270 = vperm.xlu1 %1229, %v1588_v56  }
  0xeb   :  { %778 = vperm.xlu2 %1228, %v1595_v59  }
  0xec   :  { %v730_v62 = vpop.permute.xlu2 %729 }
  0xed   :  { %v1602_v0 = vadd.f32 %v730_v62, %v679_v61 }
  0xf0   :  { %273 = vperm.xlu0 %1230, %v1600_v63   ;;  %781 = vperm.xlu1 %1229, %v1602_v0  }
  0xf3   :  { %276 = vperm.xlu2 %1228, %v1607_v4  }
  0xf4   :  { %v737_v7 = vpop.permute.xlu2 %736 }
 0x108   :  { %v672_v5 = vpop.xlane.xlu1 %671 }
 0x109   :  { %v680_v6 = vadd.f32 %v672_v5, %v1548_v1 }
 0x10b   :  { %v1611_v8 = vadd.f32 %v737_v7, %v680_v6 }
 0x10d   :  { %784 = vperm.xlu0 %1230, %v1611_v8  }
 0x111   :  { %v256_v9 = vpop.permute.xlu2 %255 }
 0x112   :  { %v280_v21 = vperm.slane %v256_v9, %v1615_v19 }
 0x125   :  { %v764_v10 = vpop.permute.xlu2 %763 }
 0x126   :  { %v786_v46 = vperm.slane %v764_v10, %v1615_v19 }
 0x12d   :  { %v262_v11 = vpop.permute.xlu2 %261 }
 0x12e   :  { %v282_v26 = vperm.slane %v262_v11, %v1615_v19 }
 0x135   :  { %v770_v12 = vpop.permute.xlu2 %769  ;;  %v259_v14 = vpop.permute.xlu1 %258 }
 0x136   :  { %v281_v1 = vperm.slane %v259_v14, %v1615_v19  ;;  %v788_v51 = vperm.slane %v770_v12, %v1615_v19 }
 0x138   :  { %v289_v24 = vsel %vm288_vm1, %v281_v1, %v280_v21 }
 0x139   :  { %v291_v28 = vsel %vm290_vm2, %v282_v26, %v289_v24 }
 0x13d   :  { %v268_v15 = vpop.permute.xlu2 %267 }
 0x13e   :  { %v284_v31 = vperm.slane %v268_v15, %v1615_v19 }
 0x145   :  { %v779_v20 = vpop.permute.xlu2 %778 }
 0x146   :  { %v791_v62 = vperm.slane %v779_v20, %v1615_v19 }
 0x14a   :  { %v767_v13 = vpop.permute.xlu0 %766 }
 0x14b   :  { %v787_v45 = vperm.slane %v767_v13, %v1615_v19 }
 0x14d   :  { %v277_v32 = vpop.permute.xlu2 %276  ;;  %v794_v47 = vsel %vm288_vm1, %v787_v45, %v786_v46 }
 0x14e   :  { %v287_v37 = vperm.slane %v277_v32, %v1615_v19  ;;  %v795_v55 = vsel %vm290_vm2, %v788_v51, %v794_v47 }
 0x152   :  { %v265_v17 = vpop.permute.xlu0 %264  ;;  %v773_v18 = vpop.permute.xlu1 %772 }
 0x153   :  { %v283_v25 = vperm.slane %v265_v17, %v1615_v19  ;;  %v789_v48 = vperm.slane %v773_v18, %v1615_v19 }
 0x155   :  { %v293_v16 = vsel %vm292_vm3, %v283_v25, %v291_v28  ;;  %v796_v58 = vsel %vm292_vm3, %v789_v48, %v795_v55 }
 0x156   :  { %v295_v35 = vsel %vm2122_vm4, %v284_v31, %v293_v16 }
 0x15a   :  { %v776_v22 = vpop.permute.xlu0 %775  ;;  %v271_v27 = vpop.permute.xlu1 %270 }
 0x15b   :  { %v285_v30 = vperm.slane %v271_v27, %v1615_v19  ;;  %v790_v53 = vperm.slane %v776_v22, %v1615_v19 }
 0x15d   :  { %v297_v39 = vsel %vm2121_vm5, %v285_v30, %v295_v35  ;;  %v797_v60 = vsel %vm2122_vm4, %v790_v53, %v796_v58 }
 0x15e   :  { %v798_v5 = vsel %vm2121_vm5, %v791_v62, %v797_v60 }
 0x162   :  { %v274_v33 = vpop.permute.xlu0 %273  ;;  %v782_v54 = vpop.permute.xlu1 %781 }
 0x163   :  { %v286_v36 = vperm.slane %v274_v33, %v1615_v19  ;;  %v792_v61 = vperm.slane %v782_v54, %v1615_v19 }
 0x165   :  { %v299_v40 = vsel %vm2120_vm6, %v286_v36, %v297_v39  ;;  %v799_v6 = vsel %vm2120_vm6, %v792_v61, %v798_v5 }
 0x166   :  { %v301_v41 = vsel %vm2119_vm7, %v287_v37, %v299_v40 }
 0x167   :  { %v304_v43 = vsel %vm303_vm8, %v301_v41, -inf }
 0x168   :  { %305 = vmax.xlane.f32.xlu1 %v304_v43 }
 0x17f   :  { %v785_v2 = vpop.permute.xlu0 %784 }
 0x180   :  { %v793_v3 = vperm.slane %v785_v2, %v1615_v19 }
 0x182   :  { %v800_v7 = vsel %vm2119_vm7, %v793_v3, %v799_v6 }
 0x183   :  { %v802_v9 = vsel %vm303_vm8, %v800_v7, -inf }
 0x184   :  { %803 = vmax.xlane.f32.xlu2 %v802_v9 }
 0x1db   :  { %v1649_v10 = vpop.xlane.xlu1 %305 }
 0x1dc   :  { %v308_v11 = vperm.slane %v1649_v10, 0  ;;  %v311_v12 = vperm.slane %v1649_v10, 3  ;;  %v309_v15 = vperm.slane %v1649_v10, 1  ;;  %v315_v16 = vperm.slane %v1649_v10, 7 }
 0x1dd   :  { %v313_v30 = vperm.slane %v1649_v10, 5  ;;  %v310_v43 = vperm.slane %v1649_v10, 2  ;;  %v312_v55 = vperm.slane %v1649_v10, 4  ;;  %v314_v6 = vperm.slane %v1649_v10, 6 }
 0x1de   :  { %v324_v13 = vsub.f32 %v1551_v23, %v308_v11  ;;  %v327_v14 = vsub.f32 %v1576_v49, %v311_v12  ;;  %v325_v20 = vsub.f32 %v1555_v29, %v309_v15  ;;  %v331_v36 = vsub.f32 %v1607_v4, %v315_v16 }
 0x1df   :  { %v329_v37 = vsub.f32 %v1588_v56, %v313_v30  ;;  %v326_v56 = vsub.f32 %v1563_v38, %v310_v43  ;;  %v328_v61 = vsub.f32 %v1583_v52, %v312_v55  ;;  %v330_v52 = vsub.f32 %v1600_v63, %v314_v6 }
 0x1e0   :  { %v332_v17 = vmul.f32 1.442695, %v324_v13  ;;  %v338_v18 = vmul.f32 1.442695, %v327_v14  ;;  %v334_v1 = vmul.f32 1.442695, %v325_v20 }
 0x1e1   :  { %v336_v48 = vmul.f32 1.442695, %v326_v56  ;;  %v340_v62 = vmul.f32 1.442695, %v328_v61  ;;  %v344_v9 = vmul.f32 1.442695, %v330_v52 }
 0x1e2   :  { %1233 = vpow2.f32 %v332_v17 }
 0x1e3   :  { %1235 = vpow2.f32 %v338_v18 }
 0x1e4   :  { %1237 = vpow2.f32 %v334_v1 }
 0x1e8   :  { %v1657_v21 = vpop.eup %1233 }
 0x1e9   :  { %v1659_v22 = vpop.eup %1235  ;;  %357 = vperm.xlu0 %1230, %v1657_v21  }
 0x1ea   :  { %366 = vperm.xlu2 %1228, %v1659_v22   ;;  %v1663_v23 = vpop.eup %1237 }
 0x1f1   :  { %360 = vperm.xlu0 %1230, %v1663_v23  }
 0x1f7   :  { %v1666_v49 = vpop.xlane.xlu2 %803 }
 0x1f8   :  { %v811_v24 = vperm.slane %v1666_v49, 5  ;;  %v808_v29 = vperm.slane %v1666_v49, 2  ;;  %v806_v25 = vperm.slane %v1666_v49, 0  ;;  %v807_v31 = vperm.slane %v1666_v49, 1 }
 0x1f9   :  { %v812_v39 = vperm.slane %v1666_v49, 6  ;;  %v809_v51 = vperm.slane %v1666_v49, 3  ;;  %v810_v2 = vperm.slane %v1666_v49, 4  ;;  %v813_v11 = vperm.slane %v1666_v49, 7 }
 0x1fa   :  { %v827_v26 = vsub.f32 %v1595_v59, %v811_v24  ;;  %v824_v27 = vsub.f32 %v1571_v44, %v808_v29  ;;  %v822_v28 = vsub.f32 %v1559_v34, %v806_v25  ;;  %v823_v44 = vsub.f32 %v1567_v42, %v807_v31 }
 0x1fb   :  { %v346_v59 = vmul.f32 1.442695, %v331_v36  ;;  %v342_v34 = vmul.f32 1.442695, %v329_v37  ;;  %v828_v42 = vsub.f32 %v1602_v0, %v812_v39  ;;  %v825_v38 = vsub.f32 %v1578_v50, %v809_v51 }
 0x1fc   :  { %v840_v32 = vmul.f32 1.442695, %v827_v26  ;;  %v834_v33 = vmul.f32 1.442695, %v824_v27  ;;  %v830_v35 = vmul.f32 1.442695, %v822_v28  ;;  %v826_v50 = vsub.f32 %v1590_v57, %v810_v2 }
 0x1fd   :  { %v832_v41 = vmul.f32 1.442695, %v823_v44  ;;  %v842_v46 = vmul.f32 1.442695, %v828_v42  ;;  %v836_v0 = vmul.f32 1.442695, %v825_v38  ;;  %v829_v57 = vsub.f32 %v1611_v8, %v813_v11 }
 0x1fe   :  { %1239 = vpow2.f32 %v840_v32  ;;  %v838_v5 = vmul.f32 1.442695, %v826_v50 }
 0x1ff   :  { %1241 = vpow2.f32 %v834_v33  ;;  %v844_v13 = vmul.f32 1.442695, %v829_v57 }
 0x200   :  { %1243 = vpow2.f32 %v830_v35 }
 0x201   :  { %1245 = vpow2.f32 %v346_v59 }
 0x202   :  { %1247 = vpow2.f32 %v342_v34 }
 0x203   :  { %1249 = vpow2.f32 %v832_v41 }
 0x204   :  { %v1681_v40 = vpop.eup %1239  ;;  %1251 = vpow2.f32 %v842_v46 }
 0x205   :  { %v1684_v45 = vpop.eup %1241  ;;  %870 = vperm.xlu2 %1228, %v1681_v40   ;;  %1253 = vpow2.f32 %v336_v48 }
 0x206   :  { %v1687_v4 = vpop.eup %1243  ;;  %861 = vperm.xlu1 %1229, %v1684_v45   ;;  %1255 = vpow2.f32 %v836_v0 }
 0x207   :  { %855 = vperm.xlu0 %1230, %v1687_v4   ;;  %v1693_v47 = vpop.eup %1245  ;;  %1257 = vpow2.f32 %v340_v62 }
 0x208   :  { %v1696_v53 = vpop.eup %1247  ;;  %1259 = vpow2.f32 %v838_v5 }
 0x209   :  { %v1699_v54 = vpop.eup %1249  ;;  %1261 = vpow2.f32 %v344_v9 }
 0x20a   :  { %v1705_v58 = vpop.eup %1251  ;;  %1263 = vpow2.f32 %v844_v13 }
 0x20b   :  { %v1707_v60 = vpop.eup %1253 }
 0x20c   :  { %v1713_v3 = vpop.eup %1255 }
 0x20d   :  { %378 = vperm.xlu2 %1228, %v1693_v47   ;;  %v1718_v7 = vpop.eup %1257 }
 0x20e   :  { %372 = vperm.xlu1 %1229, %v1696_v53   ;;  %v1723_v12 = vpop.eup %1259 }
 0x20f   :  { %858 = vperm.xlu0 %1230, %v1699_v54   ;;  %v1727_v14 = vpop.eup %1261 }
 0x210   :  { %v1730_v10 = vpop.eup %1263 }
 0x216   :  { %873 = vperm.xlu1 %1229, %v1705_v58  }
 0x217   :  { %363 = vperm.xlu0 %1230, %v1707_v60  }
 0x21f   :  { %864 = vperm.xlu0 %1230, %v1713_v3  }
 0x227   :  { %369 = vperm.xlu0 %1230, %v1718_v7  }
 0x22f   :  { %867 = vperm.xlu0 %1230, %v1723_v12  }
 0x237   :  { %375 = vperm.xlu0 %1230, %v1727_v14  }
 0x23f   :  { %876 = vperm.xlu0 %1230, %v1730_v10  }
 0x244   :  { %v367_v49 = vpop.permute.xlu2 %366 }
 0x245   :  { %v383_v35 = vperm.slane %v367_v49, %v1615_v19 }
 0x25b   :  { %v358_v63 = vpop.permute.xlu0 %357 }
 0x25c   :  { %v380_v27 = vperm.slane %v358_v63, %v1615_v19 }
 0x25f   :  { %v871_v8 = vpop.permute.xlu2 %870 }
 0x260   :  { %v883_v2 = vperm.slane %v871_v8, %v1615_v19 }
 0x263   :  { %v361_v15 = vpop.permute.xlu0 %360 }
 0x264   :  { %v381_v25 = vperm.slane %v361_v15, %v1615_v19 }
 0x266   :  { %v388_v16 = vsel %vm288_vm1, %v381_v25, %v380_v27 }
 0x267   :  { %v379_v44 = vpop.permute.xlu2 %378 }
 0x268   :  { %v387_v48 = vperm.slane %v379_v44, %v1615_v19 }
 0x278   :  { %v862_v29 = vpop.permute.xlu1 %861 }
 0x279   :  { %v856_v17 = vpop.permute.xlu0 %855  ;;  %v880_v41 = vperm.slane %v862_v29, %v1615_v19 }
 0x27a   :  { %v878_v36 = vperm.slane %v856_v17, %v1615_v19 }
 0x280   :  { %v373_v30 = vpop.permute.xlu1 %372 }
 0x281   :  { %v859_v18 = vpop.permute.xlu0 %858  ;;  %v385_v43 = vperm.slane %v373_v30, %v1615_v19 }
 0x282   :  { %v879_v31 = vperm.slane %v859_v18, %v1615_v19 }
 0x284   :  { %v886_v59 = vsel %vm288_vm1, %v879_v31, %v878_v36 }
 0x285   :  { %v887_v51 = vsel %vm290_vm2, %v880_v41, %v886_v59 }
 0x288   :  { %v874_v50 = vpop.permute.xlu1 %873 }
 0x289   :  { %v364_v20 = vpop.permute.xlu0 %363  ;;  %v884_v52 = vperm.slane %v874_v50, %v1615_v19 }
 0x28a   :  { %v382_v26 = vperm.slane %v364_v20, %v1615_v19 }
 0x28c   :  { %v389_v32 = vsel %vm290_vm2, %v382_v26, %v388_v16 }
 0x28d   :  { %v390_v37 = vsel %vm292_vm3, %v383_v35, %v389_v32 }
 0x291   :  { %v865_v1 = vpop.permute.xlu0 %864 }
 0x292   :  { %v881_v34 = vperm.slane %v865_v1, %v1615_v19 }
 0x294   :  { %v888_v0 = vsel %vm292_vm3, %v881_v34, %v887_v51 }
 0x299   :  { %v370_v24 = vpop.permute.xlu0 %369 }
 0x29a   :  { %v384_v33 = vperm.slane %v370_v24, %v1615_v19 }
 0x29c   :  { %v391_v39 = vsel %vm2122_vm4, %v384_v33, %v390_v37 }
 0x29d   :  { %v392_v38 = vsel %vm2121_vm5, %v385_v43, %v391_v39 }
 0x2a1   :  { %v868_v28 = vpop.permute.xlu0 %867 }
 0x2a2   :  { %v882_v42 = vperm.slane %v868_v28, %v1615_v19 }
 0x2a4   :  { %v889_v61 = vsel %vm2122_vm4, %v882_v42, %v888_v0 }
 0x2a5   :  { %v890_v6 = vsel %vm2121_vm5, %v883_v2, %v889_v61 }
 0x2a6   :  { %v891_v57 = vsel %vm2120_vm6, %v884_v52, %v890_v6 }
 0x2a9   :  { %v376_v56 = vpop.permute.xlu0 %375 }
 0x2aa   :  { %v386_v46 = vperm.slane %v376_v56, %v1615_v19 }
 0x2ac   :  { %v393_v55 = vsel %vm2120_vm6, %v386_v46, %v392_v38 }
 0x2ad   :  { %v394_v62 = vsel %vm2119_vm7, %v387_v48, %v393_v55 }
 0x2ae   :  { %v396_v5 = vsel %vm303_vm8, %v394_v62, 0.0 }
 0x2af   :  { %397 = vadd.xlane.f32.xlu1 %v396_v5 }
 0x2b1   :  { %v877_v9 = vpop.permute.xlu0 %876 }
 0x2b2   :  { %v885_v11 = vperm.slane %v877_v9, %v1615_v19 }
 0x2b4   :  { %v892_v13 = vsel %vm2119_vm7, %v885_v11, %v891_v57 }
 0x2b5   :  { %v894_v63 = vsel %vm303_vm8, %v892_v13, 0.0 }
 0x2b6   :  { %895 = vadd.xlane.f32.xlu2 %v894_v63 }
 0x322   :  { %v1765_v15 = vpop.xlane.xlu1 %397 }
 0x323   :  { %v400_v17 = vperm.slane %v1765_v15, 0  ;;  %v1769_v18 = vperm.slane %v1765_v15, 1  ;;  %v1772_v20 = vperm.slane %v1765_v15, 2  ;;  %v1775_v19 = vperm.slane %v1765_v15, 6 }
 0x324   :  { %v1779_v1 = vperm.slane %v1765_v15, 5  ;;  %v1782_v49 = vperm.slane %v1765_v15, 3  ;;  %v1802_v32 = vperm.slane %v1765_v15, 4 }
 0x325   :  { %1265 = vrcp.f32 %v400_v17  ;;  %v425_v8 = vand.u32 2147483647, %v400_v17  ;;  %v427_v25 = vand.u32 2147483648, %v400_v17  ;;  %v442_v28 = vand.u32 2147483648, %v1769_v18 }
 0x326   :  { %1267 = vrcp.f32 %v1769_v18  ;;  %vm421_vm9 = vweird.f32 %v400_v17  ;;  %v440_v33 = vand.u32 2147483647, %v1769_v18  ;;  %vm436_vm11 = vweird.f32 %v1769_v18 }
 0x327   :  { %1269 = vrcp.f32 %v1772_v20  ;;  %vm1807_vm10 = vcmp.eq.f32.partialorder %v425_v8, 8.507059e+37  ;;  %v428_v37 = vor.u32 1.1754944e-38, %v427_v25  ;;  %v1816_v59 = vor.u32 1.1754944e-38, %v442_v28 }
 0x328   :  { %1271 = vrcp.f32 %v1775_v19  ;;  %v515_v34 = vand.u32 2147483647, %v1775_v19  ;;  %vm1831_vm13 = vcmp.eq.f32.partialorder %v440_v33, 8.507059e+37  ;;  %v517_v38 = vand.u32 2147483648, %v1775_v19 }
 0x329   :  { %v1784_v24 = vpop.xlane.xlu2 %895  ;;  %1273 = vrcp.f32 %v1779_v1  ;;  %vm511_vm14 = vweird.f32 %v1775_v19  ;;  %vm496_vm8 = vweird.f32 %v1779_v1  ;;  %v500_v52 = vand.u32 2147483647, %v1779_v1 }
 0x32a   :  { %v1788_v29 = vperm.slane %v1784_v24, 0  ;;  %v1792_v27 = vperm.slane %v1784_v24, 2  ;;  %v1797_v16 = vperm.slane %v1784_v24, 3  ;;  %1275 = vrcp.f32 %v1782_v49 }
 0x32b   :  { %v1266_v26 = vpop.eup %1265  ;;  %v1813_v44 = vperm.slane %v1784_v24, 1  ;;  %v1827_v56 = vperm.slane %v1784_v24, 6  ;;  %v1845_v5 = vperm.slane %v1784_v24, 7 }
 0x32c   :  { %v417_v30 = vmul.f32 %v1266_v26, %v400_v17  ;;  %v1799_v31 = vpop.eup %1267  ;;  %1277 = vrcp.f32 %v1788_v29  ;;  %vm422_vm12 = vweird.f32 %v1266_v26  ;;  %v970_v46 = vand.u32 2147483648, %v1797_v16 }
 0x32d   :  { %1279 = vrcp.f32 %v1792_v27  ;;  %v1819_v39 = vpop.eup %1269  ;;  %v432_v43 = vmul.f32 %v1799_v31, %v1769_v18  ;;  %v955_v48 = vand.u32 2147483648, %v1792_v27  ;;  %v953_v61 = vand.u32 2147483647, %v1792_v27  ;;  %vm423_vm15 = vmor %vm421_vm9, %vm422_vm12 }
 0x32e   :  { %v418_v35 = vsub.f32 1.0, %v417_v30  ;;  %1281 = vrcp.f32 %v1797_v16  ;;  %v1824_v42 = vpop.eup %1271  ;;  %v968_v6 = vand.u32 2147483647, %v1797_v16  ;;  %vm949_vm7 = vweird.f32 %v1792_v27 }
 0x32f   :  { %v1836_v0 = vpop.eup %1273  ;;  %v433_v62 = vsub.f32 1.0, %v432_v43  ;;  %v507_v2 = vmul.f32 %v1824_v42, %v1775_v19  ;;  %1283 = vrcp.f32 %v1813_v44  ;;  %vm437_vm6 = vweird.f32 %v1799_v31 }
 0x330   :  { %v419_v41 = vmul.f32 %v1266_v26, %v418_v35  ;;  %v1842_v50 = vpop.eup %1275  ;;  %vm964_vm9 = vweird.f32 %v1797_v16  ;;  %v971_v8 = vor.u32 1.1754944e-38, %v970_v46  ;;  %v956_v25 = vor.u32 1.1754944e-38, %v955_v48 }
 0x331   :  { %v434_v57 = vmul.f32 %v1799_v31, %v433_v62  ;;  %v508_v13 = vsub.f32 1.0, %v507_v2  ;;  %v492_v28 = vmul.f32 %v1836_v0, %v1779_v1  ;;  %1285 = vrcp.f32 %v1827_v56 }
 0x332   :  { %v420_v55 = vadd.f32 %v1266_v26, %v419_v41  ;;  %v1853_v9 = vpop.eup %1277  ;;  %vm1866_vm12 = vcmp.eq.f32.partialorder %v953_v61, 8.507059e+37  ;;  %1287 = vrcp.f32 %v1845_v5  ;;  %vm512_vm5 = vweird.f32 %v1824_v42 }
 0x333   :  { %v1280_v63 = vpop.eup %1279  ;;  %v435_v36 = vadd.f32 %v1799_v31, %v434_v57  ;;  %v493_v43 = vsub.f32 1.0, %v492_v28  ;;  %v915_v61 = vmul.f32 %v1853_v9, %v1788_v29  ;;  %v518_v2 = vor.u32 1.1754944e-38, %v517_v38  ;;  %vm1903_vm4 = vmor %vm511_vm14, %vm512_vm5 }
 0x334   :  { %v424_v11 = vsel %vm423_vm15, %v1266_v26, %v420_v55  ;;  %v1282_v30 = vpop.eup %1281  ;;  %v945_v33 = vmul.f32 %v1280_v63, %v1792_v27  ;;  %vm1881_vm15 = vmor %vm436_vm11, %vm437_vm6  ;;  %v509_v55 = vmul.f32 %v1824_v42, %v508_v13  ;;  %vm497_vm6 = vweird.f32 %v1836_v0 }
 0x335   :  { %v429_v17 = vsel %vm1807_vm10, %v428_v37, %v424_v11  ;;  %v960_v37 = vmul.f32 %v1282_v30, %v1797_v16  ;;  %vm1873_vm10 = vcmp.eq.f32.partialorder %v968_v6, 8.507059e+37  ;;  %v439_v48 = vsel %vm1881_vm15, %v1799_v31, %v435_v36  ;;  %v1892_v62 = vpop.eup %1283 }
 0x336   :  { %v430_v26 = vmul.f32 %v1657_v21, %v429_v17  ;;  %v946_v46 = vsub.f32 1.0, %v945_v33  ;;  %v494_v6 = vmul.f32 %v1836_v0, %v493_v43  ;;  %vm950_vm11 = vweird.f32 %v1280_v63 }
 0x337   :  { %v961_v18 = vsub.f32 1.0, %v960_v37  ;;  %v444_v57 = vsel %vm1831_vm13, %v1816_v59, %v439_v48  ;;  %v916_v31 = vsub.f32 1.0, %v915_v61  ;;  %vm965_vm15 = vweird.f32 %v1282_v30  ;;  %vm1914_vm13 = vmor %vm496_vm8, %vm497_vm6 }
 0x338   :  { %538 = vperm.xlu0 %1230, %v430_v26   ;;  %v947_v11 = vmul.f32 %v1280_v63, %v946_v46  ;;  %v495_v38 = vadd.f32 %v1836_v0, %v494_v6  ;;  %v502_v28 = vand.u32 2147483648, %v1779_v1  ;;  %v1909_v26 = vpop.eup %1285  ;;  %v510_v59 = vadd.f32 %v1824_v42, %v509_v55  ;;  %vm951_vm14 = vmor %vm949_vm7, %vm950_vm11 }
 0x339   :  { %v962_v17 = vmul.f32 %v1282_v30, %v961_v18  ;;  %v917_v36 = vmul.f32 %v1853_v9, %v916_v31  ;;  %vm920_vm5 = vweird.f32 %v1853_v9  ;;  %v1920_v37 = vpop.eup %1287  ;;  %v445_v43 = vmul.f32 %v1663_v23, %v444_v57  ;;  %vm966_vm6 = vmor %vm964_vm9, %vm965_vm15 }
 0x33a   :  { %v948_v33 = vadd.f32 %v1280_v63, %v947_v11  ;;  %v499_v46 = vsel %vm1914_vm13, %v1836_v0, %v495_v38  ;;  %vm919_vm8 = vweird.f32 %v1788_v29  ;;  %v923_v61 = vand.u32 2147483647, %v1788_v29 }
 0x33b   :  { %v963_v21 = vadd.f32 %v1282_v30, %v962_v17  ;;  %v918_v55 = vadd.f32 %v1853_v9, %v917_v36  ;;  %v925_v27 = vand.u32 2147483648, %v1788_v29  ;;  %vm501_vm7 = vcmp.eq.f32.partialorder %v500_v52, 8.507059e+37  ;;  %vm1942_vm11 = vmor %vm919_vm8, %vm920_vm5 }
 0x33c   :  { %v952_v48 = vsel %vm951_vm14, %v1280_v63, %v948_v33  ;;  %v503_v0 = vor.u32 1.1754944e-38, %v502_v28  ;;  %v514_v29 = vsel %vm1903_vm4, %v1824_v42, %v510_v59  ;;  %v1020_v35 = vmul.f32 %v1920_v37, %v1845_v5 }
 0x33d   :  { %v967_v18 = vsel %vm966_vm6, %v1282_v30, %v963_v21  ;;  %v957_v23 = vsel %vm1866_vm12, %v956_v25, %v952_v48  ;;  %v922_v1 = vsel %vm1942_vm11, %v1853_v9, %v918_v55  ;;  %v926_v30 = vor.u32 1.1754944e-38, %v925_v27 }
 0x33e   :  { %v972_v63 = vsel %vm1873_vm10, %v971_v8, %v967_v18  ;;  %v958_v6 = vmul.f32 %v1684_v45, %v957_v23  ;;  %v504_v25 = vsel %vm501_vm7, %v503_v0, %v499_v46  ;;  %1289 = vrcp.f32 %v1802_v32 }
 0x33f   :  { %v973_v52 = vmul.f32 %v1713_v3, %v972_v63  ;;  %vm516_vm9 = vcmp.eq.f32.partialorder %v515_v34, 8.507059e+37  ;;  %vm924_vm12 = vcmp.eq.f32.partialorder %v923_v61, 8.507059e+37  ;;  %v1005_v45 = vmul.f32 %v1909_v26, %v1827_v56 }
 0x340   :  { %543 = vperm.xlu0 %1230, %v445_v43   ;;  %1046 = vperm.xlu2 %1228, %v958_v6   ;;  %v1964_v42 = vperm.slane %v1784_v24, 4  ;;  %v519_v3 = vsel %vm516_vm9, %v518_v2, %v514_v29  ;;  %v927_v9 = vsel %vm924_vm12, %v926_v30, %v922_v1  ;;  %v1021_v8 = vsub.f32 1.0, %v1020_v35 }
 0x341   :  { %1051 = vperm.xlu1 %1229, %v973_v52   ;;  %v505_v41 = vmul.f32 %v1696_v53, %v504_v25  ;;  %vm1024_vm4 = vweird.f32 %v1845_v5  ;;  %vm1025_vm10 = vweird.f32 %v1920_v37  ;;  %v1006_v11 = vsub.f32 1.0, %v1005_v45 }
 0x342   :  { %v1022_v19 = vmul.f32 %v1920_v37, %v1021_v8  ;;  %v1028_v34 = vand.u32 2147483647, %v1845_v5  ;;  %v1030_v57 = vand.u32 2147483648, %v1845_v5  ;;  %v930_v31 = vmul.f32 %v1892_v62, %v1813_v44  ;;  %vm1987_vm5 = vmor %vm1024_vm4, %vm1025_vm10 }
 0x343   :  { %v928_v2 = vmul.f32 %v1687_v4, %v927_v9  ;;  %v1007_v17 = vmul.f32 %v1909_v26, %v1006_v11  ;;  %vm1009_vm15 = vweird.f32 %v1827_v56  ;;  %vm1010_vm13 = vweird.f32 %v1909_v26 }
 0x344   :  { %v1023_v53 = vadd.f32 %v1920_v37, %v1022_v19  ;;  %v1013_v13 = vand.u32 2147483647, %v1827_v56  ;;  %v1015_v38 = vand.u32 2147483648, %v1827_v56  ;;  %v931_v28 = vsub.f32 1.0, %v930_v31  ;;  %v1981_v33 = vpop.eup %1289  ;;  %vm2003_vm8 = vmor %vm1009_vm15, %vm1010_vm13 }
 0x345   :  { %v1008_v59 = vadd.f32 %v1909_v26, %v1007_v17  ;;  %v938_v51 = vand.u32 2147483647, %v1813_v44  ;;  %v940_v36 = vand.u32 2147483648, %v1813_v44  ;;  %v447_v21 = vmul.f32 %v1819_v39, %v1772_v20 }
 0x346   :  { %v520_v43 = vmul.f32 %v1727_v14, %v519_v3  ;;  %vm1997_vm14 = vcmp.eq.f32.partialorder %v1028_v34, 8.507059e+37  ;;  %v932_v48 = vmul.f32 %v1892_v62, %v931_v28  ;;  %vm935_vm6 = vweird.f32 %v1892_v62 }
 0x347   :  { %v1027_v55 = vsel %vm1987_vm5, %v1920_v37, %v1023_v53  ;;  %v1031_v14 = vor.u32 1.1754944e-38, %v1030_v57  ;;  %v1012_v61 = vsel %vm2003_vm8, %v1909_v26, %v1008_v59  ;;  %v448_v27 = vsub.f32 1.0, %v447_v21 }
 0x348   :  { %1036 = vperm.xlu0 %1230, %v928_v2   ;;  %563 = vperm.xlu2 %1228, %v505_v41   ;;  %vm1014_vm7 = vcmp.eq.f32.partialorder %v1013_v13, 8.507059e+37  ;;  %v1016_v56 = vor.u32 1.1754944e-38, %v1015_v38  ;;  %v933_v18 = vadd.f32 %v1892_v62, %v932_v48  ;;  %vm934_vm11 = vweird.f32 %v1813_v44 }
 0x349   :  { %568 = vperm.xlu1 %1229, %v520_v43   ;;  %vm936_vm9 = vmor %vm934_vm11, %vm935_vm6  ;;  %vm939_vm12 = vcmp.eq.f32.partialorder %v938_v51, 8.507059e+37  ;;  %v941_v23 = vor.u32 1.1754944e-38, %v940_v36  ;;  %v449_v0 = vmul.f32 %v1819_v39, %v448_v27  ;;  %v462_v37 = vmul.f32 %v1842_v50, %v1782_v49 }
 0x34a   :  { %v1032_v16 = vsel %vm1997_vm14, %v1031_v14, %v1027_v55  ;;  %v1017_v26 = vsel %vm1014_vm7, %v1016_v56, %v1012_v61  ;;  %v937_v63 = vsel %vm936_vm9, %v1892_v62, %v933_v18  ;;  %vm452_vm4 = vweird.f32 %v1819_v39 }
 0x34b   :  { %v942_v6 = vsel %vm939_vm12, %v941_v23, %v937_v63  ;;  %v450_v29 = vadd.f32 %v1819_v39, %v449_v0  ;;  %v457_v44 = vand.u32 2147483648, %v1772_v20  ;;  %v463_v1 = vsub.f32 1.0, %v462_v37 }
 0x34c   :  { %v943_v52 = vmul.f32 %v1699_v54, %v942_v6  ;;  %vm451_vm10 = vweird.f32 %v1772_v20  ;;  %v455_v25 = vand.u32 2147483647, %v1772_v20  ;;  %1291 = vrcp.f32 %v1964_v42 }
 0x34d   :  { %v1018_v30 = vmul.f32 %v1705_v58, %v1017_v26  ;;  %vm453_vm15 = vmor %vm451_vm10, %vm452_vm4  ;;  %v1033_v62 = vmul.f32 %v1730_v10, %v1032_v16  ;;  %v464_v45 = vmul.f32 %v1842_v50, %v463_v1  ;;  %v477_v3 = vmul.f32 %v1981_v33, %v1802_v32 }
 0x34e   :  { %v454_v35 = vsel %vm453_vm15, %v1819_v39, %v450_v29  ;;  %v458_v54 = vor.u32 1.1754944e-38, %v457_v44  ;;  %vm456_vm13 = vcmp.eq.f32.partialorder %v455_v25, 8.507059e+37  ;;  %v2037_v20 = vperm.slane %v1784_v24, 5 }
 0x34f   :  { %v465_v58 = vadd.f32 %v1842_v50, %v464_v45  ;;  %vm467_vm5 = vweird.f32 %v1842_v50  ;;  %v478_v10 = vsub.f32 1.0, %v477_v3  ;;  %v472_v39 = vand.u32 2147483648, %v1782_v49 }
 0x350   :  { %1041 = vperm.xlu0 %1230, %v943_v52   ;;  %1066 = vperm.xlu2 %1228, %v1018_v30   ;;  %v459_v9 = vsel %vm456_vm13, %v458_v54, %v454_v35  ;;  %vm466_vm14 = vweird.f32 %v1782_v49  ;;  %v470_v11 = vand.u32 2147483647, %v1782_v49  ;;  %1293 = vrcp.f32 %v2037_v20 }
 0x351   :  { %1071 = vperm.xlu1 %1229, %v1033_v62   ;;  %v460_v41 = vmul.f32 %v1707_v60, %v459_v9  ;;  %vm468_vm8 = vmor %vm466_vm14, %vm467_vm5  ;;  %v479_v19 = vmul.f32 %v1981_v33, %v478_v10  ;;  %v473_v57 = vor.u32 1.1754944e-38, %v472_v39  ;;  %v407_v31 = vperm.slane %v1765_v15, 7 }
 0x352   :  { %v1292_v8 = vpop.eup %1291  ;;  %v469_v24 = vsel %vm468_vm8, %v1842_v50, %v465_v58  ;;  %vm471_vm6 = vcmp.eq.f32.partialorder %v470_v11, 8.507059e+37  ;;  %vm482_vm7 = vweird.f32 %v1981_v33  ;;  %v487_v53 = vand.u32 2147483648, %v1802_v32  ;;  %v1298_v58 = vld [vmem:[#allocation8 + $0x8] sm:$0xff]  ;;  %v1300_v11 = vld [vmem:[#allocation7] sm:$0xff] }
 0x353   :  { %v975_v34 = vmul.f32 %v1292_v8, %v1964_v42  ;;  %v474_v2 = vsel %vm471_vm6, %v473_v57, %v469_v24  ;;  %v480_v60 = vadd.f32 %v1981_v33, %v479_v19  ;;  %vm481_vm11 = vweird.f32 %v1802_v32 }
 0x354   :  { %v475_v13 = vmul.f32 %v1659_v22, %v474_v2  ;;  %v485_v50 = vand.u32 2147483647, %v1802_v32  ;;  %1295 = vrcp.f32 %v407_v31  ;;  %vm483_vm9 = vmor %vm481_vm11, %vm482_vm7  ;;  %v488_v4 = vor.u32 1.1754944e-38, %v487_v53  ;;  %v1302_v2 = vld [vmem:[#allocation8 + $0x18] sm:$0xff] }
 0x355   :  { %v976_v49 = vsub.f32 1.0, %v975_v34  ;;  %v484_v15 = vsel %vm483_vm9, %v1981_v33, %v480_v60  ;;  %vm980_vm4 = vweird.f32 %v1292_v8  ;;  %v985_v22 = vand.u32 2147483648, %v1964_v42  ;;  %v1301_v34 = vld [vmem:[#allocation7 + $0x8] sm:$0xff] }
 0x356   :  { %v1294_v17 = vpop.eup %1293  ;;  %vm486_vm12 = vcmp.eq.f32.partialorder %v485_v50, 8.507059e+37  ;;  %vm979_vm10 = vweird.f32 %v1964_v42  ;;  %v983_v32 = vand.u32 2147483647, %v1964_v42  ;;  %v1000_v27 = vand.u32 2147483648, %v2037_v20  ;;  %v1304_v50 = vld [vmem:[#allocation7 + $0x10] sm:$0xff] }
 0x357   :  { %v977_v38 = vmul.f32 %v1292_v8, %v976_v49  ;;  %v990_v28 = vmul.f32 %v1294_v17, %v2037_v20  ;;  %v489_v59 = vsel %vm486_vm12, %v488_v4, %v484_v15  ;;  %vm981_vm15 = vmor %vm979_vm10, %vm980_vm4  ;;  %v986_v48 = vor.u32 1.1754944e-38, %v985_v22  ;;  %v1305_v4 = vld [vmem:[#allocation7 + $0x18] sm:$0xff]  ;;  %v1306_v22 = vld [vmem:[#allocation7 + $0x20] sm:$0xff] }
 0x358   :  { %548 = vperm.xlu0 %1230, %v460_v41   ;;  %v490_v43 = vmul.f32 %v1718_v7, %v489_v59  ;;  %vm984_vm13 = vcmp.eq.f32.partialorder %v983_v32, 8.507059e+37  ;;  %vm995_vm5 = vweird.f32 %v1294_v17  ;;  %vm994_vm14 = vweird.f32 %v2037_v20 }
 0x359   :  { %v978_v51 = vadd.f32 %v1292_v8, %v977_v38  ;;  %v991_v36 = vsub.f32 1.0, %v990_v28  ;;  %v998_v7 = vand.u32 2147483647, %v2037_v20  ;;  %vm996_vm8 = vmor %vm994_vm14, %vm995_vm5  ;;  %v1001_v23 = vor.u32 1.1754944e-38, %v1000_v27  ;;  %v109_v27 = vld [vmem:[#allocation10 + $0x18] sm:$0xff] }
 0x35a   :  { %v1296_v21 = vpop.eup %1295  ;;  %v532_v16 = vand.u32 2147483648, %v407_v31  ;;  %vm526_vm11 = vweird.f32 %v407_v31  ;;  %v530_v63 = vand.u32 2147483647, %v407_v31  ;;  %1213 = vmatpush.msra.mxu1 %v109_v27  ;;  %1187 = vmatpush.msra.mxu0 %v109_v27  ;;  %vm2145_vm4 = vcmask 1044484  }
 0x35b   :  { %v982_v33 = vsel %vm981_vm15, %v1292_v8, %v978_v51  ;;  %v992_v46 = vmul.f32 %v1294_v17, %v991_v36  ;;  %v522_v5 = vmul.f32 %v1296_v21, %v407_v31  ;;  %vm999_vm6 = vcmp.eq.f32.partialorder %v998_v7, 8.507059e+37  ;;  %v1299_v8 = vld [vmem:[#allocation8] sm:$0xff] }
 0x35c   :  { %v987_v55 = vsel %vm984_vm13, %v986_v48, %v982_v33  ;;  %vm527_vm7 = vweird.f32 %v1296_v21  ;;  %v533_v6 = vor.u32 1.1754944e-38, %v532_v16  ;;  %vm531_vm12 = vcmp.eq.f32.partialorder %v530_v63, 8.507059e+37  ;;  %v1307_v33 = vld [vmem:[#allocation7 + $0x28] sm:$0xff]  ;;  %vm2148_vm13 = vmmov %vm2145_vm4 }
 0x35d   :  { %v993_v14 = vadd.f32 %v1294_v17, %v992_v46  ;;  %v523_v61 = vsub.f32 1.0, %v522_v5  ;;  %v988_v56 = vmul.f32 %v1723_v12, %v987_v55  ;;  %vm528_vm9 = vmor %vm526_vm11, %vm527_vm7  ;;  %vm2146_vm10 = vcmask 1045509  }
 0x35e   :  { %vm2147_vm15 = vcmask 1046534  }
 0x35f   :  { %v997_v42 = vsel %vm996_vm8, %v1294_v17, %v993_v14  ;;  %v524_v18 = vmul.f32 %v1296_v21, %v523_v61  ;;  %v1303_v17 = vld [vmem:[#allocation8 + $0x30] sm:$0xff]  ;;  %vm2151_vm5 = vmmov %vm2147_vm15 }
 0x360   :  { %553 = vperm.xlu0 %1230, %v475_v13   ;;  %v1002_v0 = vsel %vm999_vm6, %v1001_v23, %v997_v42  ;;  %v1308_v42 = vld [vmem:[#allocation8 + $0x38] sm:$0xff] }
 0x361   :  { %v525_v37 = vadd.f32 %v1296_v21, %v524_v18  ;;  %v1003_v26 = vmul.f32 %v1681_v40, %v1002_v0  ;;  %v1297_v40 = vld [vmem:[#allocation8 + $0x10] sm:$0xff] }
 0x363   :  { %v529_v12 = vsel %vm528_vm9, %v1296_v21, %v525_v37 }
 0x364   :  { %v534_v29 = vsel %vm531_vm12, %v533_v6, %v529_v12 }
 0x365   :  { %v535_v44 = vmul.f32 %v1693_v47, %v534_v29 }
 0x368   :  { %558 = vperm.xlu0 %1230, %v490_v43  }
 0x370   :  { %1056 = vperm.xlu0 %1230, %v988_v56   ;;  %v108_v56 = vld [vmem:[#allocation10 + $0x10] sm:$0xff] }
 0x371   :  { %1214 = vmatpush.msra.mxu1 %v108_v56  ;;  %1188 = vmatpush.msra.mxu0 %v108_v56 }
 0x378   :  { %1061 = vperm.xlu0 %1230, %v1003_v26   ;;  %v107_v26 = vld [vmem:[#allocation10 + $0x8] sm:$0xff] }
 0x379   :  { %1215 = vmatpush.msra.mxu1 %v107_v26  ;;  %1189 = vmatpush.msra.mxu0 %v107_v26 }
 0x380   :  { %573 = vperm.xlu0 %1230, %v535_v44  }
 0x39a   :  { %v1047_v62 = vpop.permute.xlu2 %1046 }
 0x39b   :  { %v1076_v54 = vmul.f32 %v1297_v40, %v1047_v62 }
 0x39d   :  { %v1096_v47 = vsel %vm139_vm0, %v1076_v54, 0.0 }
 0x39e   :  { %v1097_v31 = vrot.slane %v1096_v47, 4 }
 0x3a0   :  { %v1098_v32 = vadd.f32 %v1097_v31, %v1096_v47 }
 0x3a2   :  { %v564_v3 = vpop.permute.xlu2 %563  ;;  %v1099_v63 = vrot.slane %v1098_v32, 2 }
 0x3a3   :  { %v581_v46 = vmul.f32 %v1307_v33, %v564_v3  ;;  %v1309_v3 = vld [vmem:[#allocation8 + $0x20] sm:$0xff] }
 0x3a5   :  { %v619_v29 = vsel %vm139_vm0, %v581_v46, 0.0 }
 0x3aa   :  { %v539_v1 = vpop.permute.xlu0 %538  ;;  %v1067_v41 = vpop.permute.xlu2 %1066 }
 0x3ab   :  { %v576_v24 = vmul.f32 %v1300_v11, %v539_v1  ;;  %v1080_v53 = vmul.f32 %v1303_v17, %v1067_v41 }
 0x3ad   :  { %v584_v28 = vsel %vm139_vm0, %v576_v24, 0.0  ;;  %v1124_v48 = vsel %vm139_vm0, %v1080_v53, 0.0 }
 0x3ae   :  { %v585_v55 = vrot.slane %v584_v28, 4  ;;  %v1125_v12 = vrot.slane %v1124_v48, 4 }
 0x3b0   :  { %v586_v44 = vadd.f32 %v585_v55, %v584_v28 }
 0x3b2   :  { %v544_v52 = vpop.permute.xlu0 %543  ;;  %v587_v31 = vrot.slane %v586_v44, 2 }
 0x3b3   :  { %v1052_v35 = vpop.permute.xlu1 %1051  ;;  %v577_v57 = vmul.f32 %v1301_v34, %v544_v52 }
 0x3b4   :  { %v1077_v60 = vmul.f32 %v1302_v2, %v1052_v35 }
 0x3b5   :  { %v591_v51 = vsel %vm139_vm0, %v577_v57, 0.0  ;;  %v1100_v57 = vadd.f32 %v1099_v63, %v1098_v32 }
 0x3b6   :  { %v1103_v5 = vsel %vm139_vm0, %v1077_v60, 0.0  ;;  %v592_v7 = vrot.slane %v591_v51, 4 }
 0x3b7   :  { %v1104_v0 = vrot.slane %v1103_v5, 4  ;;  %v1101_v33 = vrot.slane %v1100_v57, 1 }
 0x3b8   :  { %v593_v62 = vadd.f32 %v592_v7, %v591_v51 }
 0x3b9   :  { %v1105_v54 = vadd.f32 %v1104_v0, %v1103_v5 }
 0x3ba   :  { %v1037_v25 = vpop.permute.xlu0 %1036  ;;  %v594_v2 = vrot.slane %v593_v62, 2 }
 0x3bb   :  { %v2068_v20 = vpop.permute.xlu1 %568  ;;  %v1074_v39 = vmul.f32 %v1299_v8, %v1037_v25  ;;  %v620_v8 = vrot.slane %v619_v29, 4 }
 0x3bc   :  { %v595_v5 = vadd.f32 %v594_v2, %v593_v62 }
 0x3bd   :  { %v1082_v49 = vsel %vm139_vm0, %v1074_v39, 0.0  ;;  %v1126_v39 = vadd.f32 %v1125_v12, %v1124_v48 }
 0x3be   :  { %v1083_v36 = vrot.slane %v1082_v49, 4  ;;  %v596_v63 = vrot.slane %v595_v5, 1 }
 0x3c0   :  { %v1084_v37 = vadd.f32 %v1083_v36, %v1082_v49  ;;  %v1106_v49 = vrot.slane %v1105_v54, 2  ;;  %v588_v36 = vadd.f32 %v587_v31, %v586_v44 }
 0x3c2   :  { %v1042_v30 = vpop.permute.xlu0 %1041  ;;  %v1107_v46 = vadd.f32 %v1106_v49, %v1105_v54  ;;  %v589_v0 = vrot.slane %v588_v36, 1 }
 0x3c3   :  { %v1075_v10 = vmul.f32 %v1298_v58, %v1042_v30  ;;  %v1072_v21 = vpop.permute.xlu1 %1071  ;;  %v106_v30 = vld [vmem:[#allocation10] sm:$0xff] }
 0x3c4   :  { %v1081_v18 = vmul.f32 %v1308_v42, %v1072_v21  ;;  %1216 = vmatpush.msra.mxu1 %v106_v30  ;;  %1190 = vmatpush.msra.mxu0 %v106_v30  ;;  %v1108_v26 = vrot.slane %v1107_v46, 1 }
 0x3c5   :  { %v1089_v19 = vsel %vm139_vm0, %v1075_v10, 0.0  ;;  %v1085_v10 = vrot.slane %v1084_v37, 2 }
 0x3c6   :  { %v1090_v13 = vrot.slane %v1089_v19, 4  ;;  %v1131_v35 = vsel %vm139_vm0, %v1081_v18, 0.0 }
 0x3c7   :  { %v1132_v11 = vrot.slane %v1131_v35, 4 }
 0x3c8   :  { %v1091_v14 = vadd.f32 %v1090_v13, %v1089_v19  ;;  %v621_v13 = vadd.f32 %v620_v8, %v619_v29  ;;  %v1102_v29 = vadd.f32 %v1101_v33, %v1100_v57  ;;  %v1109_v8 = vadd.f32 %v1108_v26, %v1107_v46 }
 0x3ca   :  { %v549_v45 = vpop.permute.xlu0 %548  ;;  %v1092_v1 = vrot.slane %v1091_v14, 2  ;;  %v622_v55 = vrot.slane %v621_v13, 2 }
 0x3cb   :  { %v578_v15 = vmul.f32 %v1304_v50, %v549_v45  ;;  %v1127_v50 = vrot.slane %v1126_v39, 2 }
 0x3cc   :  { %v1093_v24 = vadd.f32 %v1092_v1, %v1091_v14  ;;  %v623_v44 = vadd.f32 %v622_v55, %v621_v13 }
 0x3cd   :  { %v598_v61 = vsel %vm139_vm0, %v578_v15, 0.0 }
 0x3ce   :  { %v599_v6 = vrot.slane %v598_v61, 4  ;;  %v1094_v28 = vrot.slane %v1093_v24, 1 }
 0x3d0   :  { %v600_v47 = vadd.f32 %v599_v6, %v598_v61  ;;  %v1095_v7 = vadd.f32 %v1094_v28, %v1093_v24 }
 0x3d2   :  { %v554_v9 = vpop.permute.xlu0 %553  ;;  %v601_v15 = vrot.slane %v600_v47, 2 }
 0x3d3   :  { %v579_v59 = vmul.f32 %v1305_v4, %v554_v9  ;;  %v1310_v9 = vld [vmem:[#allocation7 + $0x30] sm:$0xff] }
 0x3d4   :  { %v582_v58 = vmul.f32 %v1310_v9, %v2068_v20  ;;  %v1086_v20 = vadd.f32 %v1085_v10, %v1084_v37  ;;  %v602_v14 = vadd.f32 %v601_v15, %v600_v47  ;;  %v1312_v9 = vld [vmem:[#allocation7 + $0x38] sm:$0xff]  ;;  %v590_v10 = vadd.f32 %v589_v0, %v588_v36 }
 0x3d5   :  { %v605_v23 = vsel %vm139_vm0, %v579_v59, 0.0 }
 0x3d6   :  { %v606_v52 = vrot.slane %v605_v23, 4  ;;  %v626_v17 = vsel %vm139_vm0, %v582_v58, 0.0  ;;  %v1087_v48 = vrot.slane %v1086_v20, 1  ;;  %v603_v1 = vrot.slane %v602_v14, 1 }
 0x3d7   :  { %v627_v21 = vrot.slane %v626_v17, 4 }
 0x3d8   :  { %v607_v19 = vadd.f32 %v606_v52, %v605_v23  ;;  %v1128_v23 = vadd.f32 %v1127_v50, %v1126_v39  ;;  %v1088_v12 = vadd.f32 %v1087_v48, %v1086_v20  ;;  %v597_v39 = vadd.f32 %v596_v63, %v595_v5 }
 0x3d9   :  { %v628_v37 = vadd.f32 %v627_v21, %v626_v17 }
 0x3da   :  { %v559_v38 = vpop.permute.xlu0 %558  ;;  %v608_v4 = vrot.slane %v607_v19, 2  ;;  %v1161_v30 = vsel %vm288_vm1, %v1095_v7, %v1088_v12  ;;  %v1146_v20 = vsel %vm288_vm1, %v597_v39, %v590_v10  ;;  %vm2149_vm1 = vcmask 1047559  }
 0x3db   :  { %v580_v43 = vmul.f32 %v1306_v22, %v559_v38  ;;  %v1133_v38 = vadd.f32 %v1132_v11, %v1131_v35  ;;  %vm2152_vm14 = vmmov %vm2149_vm1 }
 0x3dc   :  { %v609_v42 = vadd.f32 %v608_v4, %v607_v19  ;;  %v1162_v19 = vsel %vm290_vm2, %v1102_v29, %v1161_v30 }
 0x3dd   :  { %v612_v16 = vsel %vm139_vm0, %v580_v43, 0.0  ;;  %v1311_v43 = vld [vmem:[#allocation8 + $0x28] sm:$0xff]  ;;  %v1134_v56 = vrot.slane %v1133_v38, 2  ;;  %v1163_v50 = vsel %vm292_vm3, %v1109_v8, %v1162_v19 }
 0x3de   :  { %v613_v45 = vrot.slane %v612_v16, 4  ;;  %v610_v62 = vrot.slane %v609_v42, 1 }
 0x3e0   :  { %v614_v60 = vadd.f32 %v613_v45, %v612_v16  ;;  %v611_v57 = vadd.f32 %v610_v62, %v609_v42 }
 0x3e2   :  { %v1057_v25 = vpop.permute.xlu0 %1056  ;;  %v615_v22 = vrot.slane %v614_v60, 2 }
 0x3e3   :  { %v1078_v40 = vmul.f32 %v1309_v3, %v1057_v25  ;;  %v1135_v25 = vadd.f32 %v1134_v56, %v1133_v38  ;;  %v1129_v3 = vrot.slane %v1128_v23, 1  ;;  %v1232_v56 = vld [vmem:[%s2117_s7] ss:$0 sm:$0xff] }
 0x3e4   :  { %v616_v16 = vadd.f32 %v615_v22, %v614_v60  ;;  %v624_v60 = vrot.slane %v623_v44, 1 }
 0x3e5   :  { %v1110_v41 = vsel %vm139_vm0, %v1078_v40, 0.0  ;;  %v629_v40 = vrot.slane %v628_v37, 2  ;;  %v1130_v15 = vadd.f32 %v1129_v3, %v1128_v23 }
 0x3e6   :  { %v1111_v34 = vrot.slane %v1110_v41, 4  ;;  %v617_v54 = vrot.slane %v616_v16, 1 }
 0x3e7   :  { %v630_v49 = vadd.f32 %v629_v40, %v628_v37 }
 0x3e8   :  { %v1112_v53 = vadd.f32 %v1111_v34, %v1110_v41  ;;  %v604_v41 = vadd.f32 %v603_v1, %v602_v14  ;;  %v1136_v34 = vrot.slane %v1135_v25, 1  ;;  %v618_v17 = vadd.f32 %v617_v54, %v616_v16 }
 0x3e9   :  { %v631_v21 = vrot.slane %v630_v49, 1 }
 0x3ea   :  { %v1113_v59 = vrot.slane %v1112_v53, 2  ;;  %v1062_v51 = vpop.permute.xlu0 %1061  ;;  %v1147_v38 = vsel %vm290_vm2, %v604_v41, %v1146_v20  ;;  %vm2150_vm2 = vmmov %vm2146_vm10 }
 0x3eb   :  { %v1079_v32 = vmul.f32 %v1311_v43, %v1062_v51  ;;  %v1148_v36 = vsel %vm292_vm3, %v611_v57, %v1147_v38  ;;  %v632_v55 = vadd.f32 %v631_v21, %v630_v49  ;;  %vm1202_vm3 = vcmask 7168  }
 0x3ec   :  { %v1114_v61 = vadd.f32 %v1113_v59, %v1112_v53  ;;  %v1137_v59 = vadd.f32 %v1136_v34, %v1135_v25  ;;  %v1149_v43 = vsel %vm2148_vm13, %v618_v17, %v1148_v36 }
 0x3ed   :  { %v1117_v27 = vsel %vm139_vm0, %v1079_v32, 0.0  ;;  %v625_v32 = vadd.f32 %v624_v60, %v623_v44 }
 0x3ee   :  { %v1118_v18 = vrot.slane %v1117_v27, 4  ;;  %v1115_v52 = vrot.slane %v1114_v61, 1 }
 0x3ef   :  { %v1150_v48 = vsel %vm2150_vm2, %v625_v32, %v1149_v43 }
 0x3f0   :  { %v1119_v6 = vadd.f32 %v1118_v18, %v1117_v27  ;;  %v1116_v11 = vadd.f32 %v1115_v52, %v1114_v61  ;;  %v1151_v61 = vsel %vm2151_vm5, %v632_v55, %v1150_v48 }
 0x3f2   :  { %v1120_v35 = vrot.slane %v1119_v6, 2  ;;  %v574_v45 = vpop.permute.xlu0 %573  ;;  %v1164_v28 = vsel %vm2145_vm4, %v1116_v11, %v1163_v50 }
 0x3f3   :  { %v583_v58 = vmul.f32 %v1312_v9, %v574_v45 }
 0x3f4   :  { %v1121_v47 = vadd.f32 %v1120_v35, %v1119_v6 }
 0x3f5   :  { %v633_v24 = vsel %vm139_vm0, %v583_v58, 0.0 }
 0x3f6   :  { %v1122_v31 = vrot.slane %v1121_v47, 1  ;;  %v634_v2 = vrot.slane %v633_v24, 4 }
 0x3f8   :  { %v1123_v53 = vadd.f32 %v1122_v31, %v1121_v47  ;;  %v635_v13 = vadd.f32 %v634_v2, %v633_v24 }
 0x3fa   :  { %v636_v4 = vrot.slane %v635_v13, 2  ;;  %v1165_v51 = vsel %vm2146_vm10, %v1123_v53, %v1164_v28 }
 0x3fb   :  { %v1166_v22 = vsel %vm2147_vm15, %v1130_v15, %v1165_v51 }
 0x3fc   :  { %v637_v33 = vadd.f32 %v636_v4, %v635_v13  ;;  %v1167_v46 = vsel %vm2149_vm1, %v1137_v59, %v1166_v22 }
 0x3fd   :  { %1212 = vmatmul.msk.f32.vlgmr.msra.gmra.mxu1 %vm139_vm0, %v1167_v46 }
 0x3fe   :  { %v638_v5 = vrot.slane %v637_v33, 1 }
 0x400   :  { %v639_v14 = vadd.f32 %v638_v5, %v637_v33 }
 0x402   :  { %v1152_v27 = vsel %vm2152_vm14, %v639_v14, %v1151_v61 }
 0x403   :  { %1211 = vmatmul.msk.f32.vlgmr.msra.gmra.mxu0 %vm139_vm0, %v1152_v27 }
 0x47a   :  { %v1195_v7 = vpop.f32.mrf.mxu1 }
 0x47b   :  { %v1196_v18 = vadd.f32 %v1232_v56, %v1195_v7 }
 0x480   :  { %v1192_v42 = vpop.f32.mrf.mxu0 }
 0x481   :  { %v1193_v23 = vadd.f32 %v1232_v56, %v1192_v42 }
 0x483   :  { %v1198_v0 = vmul.f32 %v1196_v18, %v1193_v23 }
 0x485   :  { %v1199_v37 = vsel %vm139_vm0, %v1198_v0, 0.0 }
 0x486   :  { %1200 = vadd.xlane.f32.xlu2 %v1199_v37 }
 0x4f9   :  { %v1201_v16 = vpop.xlane.xlu2 %1200 }
 0x4fa   :  { %1203 = vst.msk [vmem:[%s2118_s8] sm:$0xff] %vm1202_vm3, %v1201_v16 }
 0x4fb   :  { %1208 = vsyncpa [#allocation4], 1 }
 0x4fc   :  { %1209 = vsyncpa [#allocation6], 1 }
 0x4fd   :  { %1210 = vsyncpa [#allocation9], 1 }

</bundles_post_ra>
